<compile_context>
chip_gen: v5e
topology: v5e:2x2
jax: 0.10.0
libtpu: 0.0.40
codegen_flags: <defaults>
</compile_context>

<pallas_src>
import functools

import jax
import jax.numpy as jnp
import numpy as np
from jax import lax
from jax.experimental import pallas as pl
from jax.experimental.pallas import tpu as pltpu

LANE = 128


def _round_up(c, m=LANE):
    return ((c + m - 1) // m) * m


def _pad_to(a, shape):
    return jnp.pad(a, [(0, t - s) for s, t in zip(a.shape, shape)])


def se_bottleneck_kernel(
    x_ref,        # (1, HW, Cinp)  f32   one sample, spatial flattened, channels padded
    ii_ref,       # (HW, 1)        i32   row index i = p // W
    jj_ref,       # (HW, 1)        i32   col index j = p %  W
    w1_ref,       # (Cinp, Cp)     bf16  conv1 (1x1)
    s1_ref,       # (1, Cp)        f32   folded bn1 scale
    b1_ref,       # (1, Cp)        f32   folded bn1 bias
    w2_ref,       # (9*Cp, Cp)     bf16  conv2 (3x3) as im2col weight
    s2_ref,       # (1, Cp)        f32
    b2_ref,       # (1, Cp)        f32
    fw1_ref,      # (Cp, Hidp)     bf16  SE fc1
    fb1_ref,      # (1, Hidp)      f32
    fw2_ref,      # (Hidp, Cp)     bf16  SE fc2
    fb2_ref,      # (1, Cp)        f32
    w3_ref,       # (Cp, Coutp)    bf16  conv3 (1x1)
    s3_ref,       # (1, Coutp)     f32
    b3_ref,       # (1, Coutp)     f32
    out_ref,      # (1, HW, Coutp) f32
    *, H, W,
):
    HW = H * W

    # ---- conv1 (1x1) + bn1 + relu ------------------------------------------
    h = jnp.dot(x_ref[0].astype(jnp.bfloat16), w1_ref[...],
                preferred_element_type=jnp.float32)
    h = jnp.maximum(h * s1_ref[...] + b1_ref[...], 0.0)          # (HW, Cp) f32

    # ---- conv2 (3x3, stride=1, pad=1) + bn2 + relu -------------------------
    # im2col: tap (kh, kw) is a rotation of the flat HW axis by (kh-1)*W+(kw-1)
    # (XLU sublane roll); wrapped / out-of-image positions are masked to zero.
    ii = ii_ref[...]
    jj = jj_ref[...]
    pieces = []
    for kh in range(3):
        dh = kh - 1
        for kw in range(3):
            dw = kw - 1
            s = dh * W + dw
            t = h if s == 0 else pltpu.roll(h, shift=(-s) % HW, axis=0)
            if s != 0:
                valid = ((ii + dh >= 0) & (ii + dh < H) &
                         (jj + dw >= 0) & (jj + dw < W))
                t = jnp.where(valid, t, 0.0)
            pieces.append(t)
    col = jnp.concatenate(pieces, axis=1).astype(jnp.bfloat16)   # (HW, 9*Cp)
    h = jnp.dot(col, w2_ref[...], preferred_element_type=jnp.float32)
    h = jnp.maximum(h * s2_ref[...] + b2_ref[...], 0.0)          # (HW, Cp)

    # ---- SE: global avg pool -> fc1 -> relu -> fc2 -> sigmoid -> rescale ---
    pooled = jnp.sum(h, axis=0, keepdims=True) * (1.0 / HW)      # (1, Cp)
    se = jnp.dot(pooled.astype(jnp.bfloat16), fw1_ref[...],
                 preferred_element_type=jnp.float32) + fb1_ref[...]
    se = jnp.maximum(se, 0.0)
    se = jnp.dot(se.astype(jnp.bfloat16), fw2_ref[...],
                 preferred_element_type=jnp.float32) + fb2_ref[...]
    se = pl.reciprocal(1.0 + jnp.exp(-se), approx=True)          # sigmoid (EUP)
    h = h * se

    # ---- conv3 (1x1) + bn3 --------------------------------------------------
    h = jnp.dot(h.astype(jnp.bfloat16), w3_ref[...],
                preferred_element_type=jnp.float32)
    h = h * s3_ref[...] + b3_ref[...]                            # (HW, Coutp)

    # ---- residual add + relu (re-read x_ref; padded channels stay zero) ----
    out_ref[0] = jnp.maximum(h + x_ref[0], 0.0).astype(out_ref.dtype)


def se_bottleneck_nhwc(x_nhwc, params):
    """x_nhwc: (N, H, W, Cin) float32. Returns (N, H, W, Cout) float32."""
    N, H, W, Cin = x_nhwc.shape
    HW = H * W
    cfg = params["w1"].shape[1]
    hid = params["fw1"].shape[1]
    Cout = params["w3"].shape[1]
    if Cin != Cout:
        raise ValueError("downsample=None requires inplanes == 4*cfg "
                         f"(got Cin={Cin}, Cout={Cout})")

    Cinp, Cp, Hidp, Coutp = (_round_up(c) for c in (Cin, cfg, hid, Cout))
    bf16 = jnp.bfloat16

    # Pad channel dims to lane width (zeros) and cast matmul weights to bf16.
    # Padded BN scale/bias and FC biases are zero, so padded channels stay zero
    # end-to-end and slicing the output back to Cout is exact.
    w1 = _pad_to(params["w1"], (Cinp, Cp)).astype(bf16)
    w2 = _pad_to(params["w2"], (9, Cp, Cp)).reshape(9 * Cp, Cp).astype(bf16)
    w3 = _pad_to(params["w3"], (Cp, Coutp)).astype(bf16)
    fw1 = _pad_to(params["fw1"], (Cp, Hidp)).astype(bf16)
    fw2 = _pad_to(params["fw2"], (Hidp, Cp)).astype(bf16)
    fb1 = _pad_to(params["fb1"], (1, Hidp))
    fb2 = _pad_to(params["fb2"], (1, Cp))
    s1 = _pad_to(params["s1"], (1, Cp))
    b1 = _pad_to(params["b1"], (1, Cp))
    s2 = _pad_to(params["s2"], (1, Cp))
    b2 = _pad_to(params["b2"], (1, Cp))
    s3 = _pad_to(params["s3"], (1, Coutp))
    b3 = _pad_to(params["b3"], (1, Coutp))

    # Input: flatten spatial, pad channels so the kernel block is lane-dense.
    xp = _pad_to(x_nhwc.reshape(N, HW, Cin), (N, HW, Cinp))

    # Static (i, j) indices for the conv2 boundary masks.
    p = jnp.arange(HW, dtype=jnp.int32)
    ii = (p // W).reshape(HW, 1)
    jj = (p % W).reshape(HW, 1)

    kernel = functools.partial(se_bottleneck_kernel, H=H, W=W)

    def const(shape):  # full array, resident across the whole grid
        return pl.BlockSpec(shape, lambda n, _s=len(shape): (0,) * _s)

    out = pl.pallas_call(
        kernel,
        out_shape=jax.ShapeDtypeStruct((N, HW, Coutp), jnp.float32),
        grid=(N,),
        in_specs=[
            pl.BlockSpec((1, HW, Cinp), lambda n: (n, 0, 0)),   # one sample / step
            const(ii.shape), const(jj.shape),
            const(w1.shape), const(s1.shape), const(b1.shape),
            const(w2.shape), const(s2.shape), const(b2.shape),
            const(fw1.shape), const(fb1.shape), const(fw2.shape), const(fb2.shape),
            const(w3.shape), const(s3.shape), const(b3.shape),
        ],
        out_specs=pl.BlockSpec((1, HW, Coutp), lambda n: (n, 0, 0)),
        compiler_params=pltpu.CompilerParams(
            dimension_semantics=("parallel",),       # megacore-shardable on v7x
            vmem_limit_bytes=48 * 1024 * 1024,       # under v7x's 64 MiB/TC budget
        ),
    )(xp, ii, jj, w1, s1, b1, w2, s2, b2, fw1, fb1, fw2, fb2, w3, s3, b3)

    return out[:, :, :Cout].reshape(N, H, W, Cout)


def se_bottleneck(x_nchw, params):
    """PyTorch-layout entry point: (N, Cin, H, W) -> (N, Cout, H, W).

    The NCHW<->NHWC transposes are wrapper glue only; keep the model NHWC
    end-to-end (call se_bottleneck_nhwc directly) to avoid the extra HBM pass.
    """
    x = jnp.transpose(x_nchw, (0, 2, 3, 1))
    out = se_bottleneck_nhwc(x, params)
    return jnp.transpose(out, (0, 3, 1, 2))


def fold_bn(gamma, beta, mean, var, eps=1e-5):
    scale = gamma / jnp.sqrt(var + eps)
    bias = beta - mean * scale
    return scale.reshape(1, -1), bias.reshape(1, -1)


def make_params(key, inplanes, cfg, reduction):
    hid = cfg // reduction
    cout = cfg * 4
    ks = jax.random.split(key, 20)
    std = 0.1
    p = {}
    p["w1"] = jax.random.normal(ks[0], (inplanes, cfg), jnp.float32) * std
    p["w2"] = jax.random.normal(ks[1], (9, cfg, cfg), jnp.float32) * std
    p["w3"] = jax.random.normal(ks[2], (cfg, cout), jnp.float32) * std
    p["fw1"] = jax.random.normal(ks[3], (cfg, hid), jnp.float32) * std
    p["fb1"] = jax.random.normal(ks[4], (1, hid), jnp.float32) * std
    p["fw2"] = jax.random.normal(ks[5], (hid, cfg), jnp.float32) * std
    p["fb2"] = jax.random.normal(ks[6], (1, cfg), jnp.float32) * std
    # BatchNorm (inference-mode, folded).  TODO(synk): training-mode batch-stat BN not modeled.
    for name, c, k0 in (("1", cfg, 7), ("2", cfg, 11), ("3", cout, 15)):
        gamma = 1.0 + 0.1 * jax.random.normal(ks[k0], (c,), jnp.float32)
        beta = 0.1 * jax.random.normal(ks[k0 + 1], (c,), jnp.float32)
        mean = 0.1 * jax.random.normal(ks[k0 + 2], (c,), jnp.float32)
        var = jnp.abs(0.5 + 0.1 * jax.random.normal(ks[k0 + 3], (c,), jnp.float32))
        p["s" + name], p["b" + name] = fold_bn(gamma, beta, mean, var)
    return p


def reference_forward(x_nchw, params):
    """Pure-JAX f32 reference (uses lax conv for the 3x3) to validate the kernel."""
    x = jnp.transpose(x_nchw, (0, 2, 3, 1))
    N, H, W, Cin = x.shape
    cfg = params["w1"].shape[1]

    h = jnp.einsum("nhwc,cd->nhwd", x, params["w1"])
    h = jnp.maximum(h * params["s1"] + params["b1"], 0.0)

    w2_hwio = params["w2"].reshape(3, 3, cfg, cfg)
    h = lax.conv_general_dilated(h, w2_hwio, (1, 1), "SAME",
                                 dimension_numbers=("NHWC", "HWIO", "NHWC"))
    h = jnp.maximum(h * params["s2"] + params["b2"], 0.0)

    pooled = jnp.mean(h, axis=(1, 2))
    se = jnp.maximum(pooled @ params["fw1"] + params["fb1"], 0.0)
    se = jax.nn.sigmoid(se @ params["fw2"] + params["fb2"])
    h = h * se[:, None, None, :]

    h = jnp.einsum("nhwc,cd->nhwd", h, params["w3"])
    h = h * params["s3"] + params["b3"]
    out = jnp.maximum(h + x, 0.0)
    return jnp.transpose(out, (0, 3, 1, 2))


if __name__ == "__main__":
    # downsample=None => inplanes == 4*cfg (residual add).  cfg=8, reduction=2.
    N, inplanes, H, W = 2, 32, 8, 8
    cfg, reduction = 8, 2

    key = jax.random.PRNGKey(0)
    kx, kp = jax.random.split(key)
    x = jax.random.normal(kx, (N, inplanes, H, W), jnp.float32)   # NCHW like PyTorch
    params = make_params(kp, inplanes, cfg, reduction)

    out = jax.jit(se_bottleneck)(x, params)
    out = jax.block_until_ready(out)

    ref = reference_forward(x, params)
    # bf16 MXU operands with f32 accumulation -> slightly looser tolerance vs f32 ref.
    np.testing.assert_allclose(np.asarray(out), np.asarray(ref), rtol=2e-2, atol=2e-2)

    print("KERNEL_OK")
</pallas_src>

<mosaic_0001>
module attributes {stable_mosaic.version = 11 : i64} {
  func.func @se_bottleneck_kernel(%arg0: i32, %arg1: memref<1x64x128xf32, #tpu.memory_space<vmem>>, %arg2: memref<64x1xi32, #tpu.memory_space<vmem>>, %arg3: memref<64x1xi32, #tpu.memory_space<vmem>>, %arg4: memref<128x128xbf16, #tpu.memory_space<vmem>>, %arg5: memref<1x128xf32, #tpu.memory_space<vmem>>, %arg6: memref<1x128xf32, #tpu.memory_space<vmem>>, %arg7: memref<1152x128xbf16, #tpu.memory_space<vmem>>, %arg8: memref<1x128xf32, #tpu.memory_space<vmem>>, %arg9: memref<1x128xf32, #tpu.memory_space<vmem>>, %arg10: memref<128x128xbf16, #tpu.memory_space<vmem>>, %arg11: memref<1x128xf32, #tpu.memory_space<vmem>>, %arg12: memref<128x128xbf16, #tpu.memory_space<vmem>>, %arg13: memref<1x128xf32, #tpu.memory_space<vmem>>, %arg14: memref<128x128xbf16, #tpu.memory_space<vmem>>, %arg15: memref<1x128xf32, #tpu.memory_space<vmem>>, %arg16: memref<1x128xf32, #tpu.memory_space<vmem>>, %arg17: memref<1x64x128xf32, #tpu.memory_space<vmem>>) attributes {dimension_semantics = [#tpu.dimension_semantics<parallel>], iteration_bounds = array<i64: 2>, scalar_prefetch = 0 : i64, scratch_operands = 0 : i64, tpu.core_type = #tpu.core_type<tc>, window_params = [{transform_indices = @transform_0, window_bounds = array<i64: 1, 64, 128>}, {pipeline_mode = #tpu.pipeline_mode<synchronous>, transform_indices = @transform_1, window_bounds = array<i64: 64, 1>}, {pipeline_mode = #tpu.pipeline_mode<synchronous>, transform_indices = @transform_2, window_bounds = array<i64: 64, 1>}, {pipeline_mode = #tpu.pipeline_mode<synchronous>, transform_indices = @transform_3, window_bounds = array<i64: 128, 128>}, {pipeline_mode = #tpu.pipeline_mode<synchronous>, transform_indices = @transform_4, window_bounds = array<i64: 1, 128>}, {pipeline_mode = #tpu.pipeline_mode<synchronous>, transform_indices = @transform_5, window_bounds = array<i64: 1, 128>}, {pipeline_mode = #tpu.pipeline_mode<synchronous>, transform_indices = @transform_6, window_bounds = array<i64: 1152, 128>}, {pipeline_mode = #tpu.pipeline_mode<synchronous>, transform_indices = @transform_7, window_bounds = array<i64: 1, 128>}, {pipeline_mode = #tpu.pipeline_mode<synchronous>, transform_indices = @transform_8, window_bounds = array<i64: 1, 128>}, {pipeline_mode = #tpu.pipeline_mode<synchronous>, transform_indices = @transform_9, window_bounds = array<i64: 128, 128>}, {pipeline_mode = #tpu.pipeline_mode<synchronous>, transform_indices = @transform_10, window_bounds = array<i64: 1, 128>}, {pipeline_mode = #tpu.pipeline_mode<synchronous>, transform_indices = @transform_11, window_bounds = array<i64: 128, 128>}, {pipeline_mode = #tpu.pipeline_mode<synchronous>, transform_indices = @transform_12, window_bounds = array<i64: 1, 128>}, {pipeline_mode = #tpu.pipeline_mode<synchronous>, transform_indices = @transform_13, window_bounds = array<i64: 128, 128>}, {pipeline_mode = #tpu.pipeline_mode<synchronous>, transform_indices = @transform_14, window_bounds = array<i64: 1, 128>}, {pipeline_mode = #tpu.pipeline_mode<synchronous>, transform_indices = @transform_15, window_bounds = array<i64: 1, 128>}, {transform_indices = @transform_16, window_bounds = array<i64: 1, 64, 128>}]} {
    %c0 = arith.constant 0 : index
    %c0_0 = arith.constant 0 : index
    %c0_1 = arith.constant 0 : index
    %0 = vector.load %arg1[%c0, %c0_0, %c0_1] : memref<1x64x128xf32, #tpu.memory_space<vmem>>, vector<1x64x128xf32>
    %1 = vector.shape_cast %0 : vector<1x64x128xf32> to vector<64x128xf32>
    %2 = arith.truncf %1 : vector<64x128xf32> to vector<64x128xbf16>
    %c0_2 = arith.constant 0 : index
    %c0_3 = arith.constant 0 : index
    %3 = vector.load %arg4[%c0_2, %c0_3] : memref<128x128xbf16, #tpu.memory_space<vmem>>, vector<128x128xbf16>
    %cst = arith.constant dense<0.000000e+00> : vector<64x128xf32>
    %4 = tpu.matmul %2, %3, %cst {dimension_numbers = #tpu.dot_dimension_numbers<[1], [0], [0], [1], [0, 0, 1, 1], [], []>} : vector<64x128xbf16>, vector<128x128xbf16>, vector<64x128xf32> -> vector<64x128xf32>
    %c0_4 = arith.constant 0 : index
    %c0_5 = arith.constant 0 : index
    %5 = vector.load %arg5[%c0_4, %c0_5] : memref<1x128xf32, #tpu.memory_space<vmem>>, vector<1x128xf32>
    %6 = vector.broadcast %5 : vector<1x128xf32> to vector<64x128xf32>
    %7 = arith.mulf %4, %6 : vector<64x128xf32>
    %c0_6 = arith.constant 0 : index
    %c0_7 = arith.constant 0 : index
    %8 = vector.load %arg6[%c0_6, %c0_7] : memref<1x128xf32, #tpu.memory_space<vmem>>, vector<1x128xf32>
    %9 = vector.broadcast %8 : vector<1x128xf32> to vector<64x128xf32>
    %10 = arith.addf %7, %9 : vector<64x128xf32>
    %cst_8 = arith.constant 0.000000e+00 : f32
    %11 = vector.broadcast %cst_8 : f32 to vector<64x128xf32>
    %12 = arith.maximumf %10, %11 : vector<64x128xf32>
    %c0_9 = arith.constant 0 : index
    %c0_10 = arith.constant 0 : index
    %13 = vector.load %arg2[%c0_9, %c0_10] : memref<64x1xi32, #tpu.memory_space<vmem>>, vector<64x1xi32>
    %c0_11 = arith.constant 0 : index
    %c0_12 = arith.constant 0 : index
    %14 = vector.load %arg3[%c0_11, %c0_12] : memref<64x1xi32, #tpu.memory_space<vmem>>, vector<64x1xi32>
    %c9_i32 = arith.constant 9 : i32
    %15 = tpu.dynamic_rotate %12 by %c9_i32 dim 0 : vector<64x128xf32>, i32 -> vector<64x128xf32>
    %c-1_i32 = arith.constant -1 : i32
    %16 = vector.broadcast %c-1_i32 : i32 to vector<64x1xi32>
    %17 = arith.addi %13, %16 : vector<64x1xi32>
    %c0_i32 = arith.constant 0 : i32
    %18 = vector.broadcast %c0_i32 : i32 to vector<64x1xi32>
    %19 = arith.cmpi sge, %17, %18 : vector<64x1xi32>
    %c-1_i32_13 = arith.constant -1 : i32
    %20 = vector.broadcast %c-1_i32_13 : i32 to vector<64x1xi32>
    %21 = arith.addi %13, %20 : vector<64x1xi32>
    %c8_i32 = arith.constant 8 : i32
    %22 = vector.broadcast %c8_i32 : i32 to vector<64x1xi32>
    %23 = arith.cmpi slt, %21, %22 : vector<64x1xi32>
    %24 = arith.andi %19, %23 : vector<64x1xi1>
    %c-1_i32_14 = arith.constant -1 : i32
    %25 = vector.broadcast %c-1_i32_14 : i32 to vector<64x1xi32>
    %26 = arith.addi %14, %25 : vector<64x1xi32>
    %c0_i32_15 = arith.constant 0 : i32
    %27 = vector.broadcast %c0_i32_15 : i32 to vector<64x1xi32>
    %28 = arith.cmpi sge, %26, %27 : vector<64x1xi32>
    %29 = arith.andi %24, %28 : vector<64x1xi1>
    %c-1_i32_16 = arith.constant -1 : i32
    %30 = vector.broadcast %c-1_i32_16 : i32 to vector<64x1xi32>
    %31 = arith.addi %14, %30 : vector<64x1xi32>
    %c8_i32_17 = arith.constant 8 : i32
    %32 = vector.broadcast %c8_i32_17 : i32 to vector<64x1xi32>
    %33 = arith.cmpi slt, %31, %32 : vector<64x1xi32>
    %34 = arith.andi %29, %33 : vector<64x1xi1>
    %cst_18 = arith.constant 0.000000e+00 : f32
    %35 = vector.shape_cast %34 : vector<64x1xi1> to vector<64x1xi1>
    %36 = vector.broadcast %35 : vector<64x1xi1> to vector<64x128xi1>
    %37 = vector.broadcast %cst_18 : f32 to vector<64x128xf32>
    %38 = arith.select %36, %15, %37 : vector<64x128xi1>, vector<64x128xf32>
    %c8_i32_19 = arith.constant 8 : i32
    %39 = tpu.dynamic_rotate %12 by %c8_i32_19 dim 0 : vector<64x128xf32>, i32 -> vector<64x128xf32>
    %c-1_i32_20 = arith.constant -1 : i32
    %40 = vector.broadcast %c-1_i32_20 : i32 to vector<64x1xi32>
    %41 = arith.addi %13, %40 : vector<64x1xi32>
    %c0_i32_21 = arith.constant 0 : i32
    %42 = vector.broadcast %c0_i32_21 : i32 to vector<64x1xi32>
    %43 = arith.cmpi sge, %41, %42 : vector<64x1xi32>
    %c-1_i32_22 = arith.constant -1 : i32
    %44 = vector.broadcast %c-1_i32_22 : i32 to vector<64x1xi32>
    %45 = arith.addi %13, %44 : vector<64x1xi32>
    %c8_i32_23 = arith.constant 8 : i32
    %46 = vector.broadcast %c8_i32_23 : i32 to vector<64x1xi32>
    %47 = arith.cmpi slt, %45, %46 : vector<64x1xi32>
    %48 = arith.andi %43, %47 : vector<64x1xi1>
    %c0_i32_24 = arith.constant 0 : i32
    %49 = vector.broadcast %c0_i32_24 : i32 to vector<64x1xi32>
    %50 = arith.addi %14, %49 : vector<64x1xi32>
    %c0_i32_25 = arith.constant 0 : i32
    %51 = vector.broadcast %c0_i32_25 : i32 to vector<64x1xi32>
    %52 = arith.cmpi sge, %50, %51 : vector<64x1xi32>
    %53 = arith.andi %48, %52 : vector<64x1xi1>
    %c0_i32_26 = arith.constant 0 : i32
    %54 = vector.broadcast %c0_i32_26 : i32 to vector<64x1xi32>
    %55 = arith.addi %14, %54 : vector<64x1xi32>
    %c8_i32_27 = arith.constant 8 : i32
    %56 = vector.broadcast %c8_i32_27 : i32 to vector<64x1xi32>
    %57 = arith.cmpi slt, %55, %56 : vector<64x1xi32>
    %58 = arith.andi %53, %57 : vector<64x1xi1>
    %cst_28 = arith.constant 0.000000e+00 : f32
    %59 = vector.shape_cast %58 : vector<64x1xi1> to vector<64x1xi1>
    %60 = vector.broadcast %59 : vector<64x1xi1> to vector<64x128xi1>
    %61 = vector.broadcast %cst_28 : f32 to vector<64x128xf32>
    %62 = arith.select %60, %39, %61 : vector<64x128xi1>, vector<64x128xf32>
    %c7_i32 = arith.constant 7 : i32
    %63 = tpu.dynamic_rotate %12 by %c7_i32 dim 0 : vector<64x128xf32>, i32 -> vector<64x128xf32>
    %c-1_i32_29 = arith.constant -1 : i32
    %64 = vector.broadcast %c-1_i32_29 : i32 to vector<64x1xi32>
    %65 = arith.addi %13, %64 : vector<64x1xi32>
    %c0_i32_30 = arith.constant 0 : i32
    %66 = vector.broadcast %c0_i32_30 : i32 to vector<64x1xi32>
    %67 = arith.cmpi sge, %65, %66 : vector<64x1xi32>
    %c-1_i32_31 = arith.constant -1 : i32
    %68 = vector.broadcast %c-1_i32_31 : i32 to vector<64x1xi32>
    %69 = arith.addi %13, %68 : vector<64x1xi32>
    %c8_i32_32 = arith.constant 8 : i32
    %70 = vector.broadcast %c8_i32_32 : i32 to vector<64x1xi32>
    %71 = arith.cmpi slt, %69, %70 : vector<64x1xi32>
    %72 = arith.andi %67, %71 : vector<64x1xi1>
    %c1_i32 = arith.constant 1 : i32
    %73 = vector.broadcast %c1_i32 : i32 to vector<64x1xi32>
    %74 = arith.addi %14, %73 : vector<64x1xi32>
    %c0_i32_33 = arith.constant 0 : i32
    %75 = vector.broadcast %c0_i32_33 : i32 to vector<64x1xi32>
    %76 = arith.cmpi sge, %74, %75 : vector<64x1xi32>
    %77 = arith.andi %72, %76 : vector<64x1xi1>
    %c1_i32_34 = arith.constant 1 : i32
    %78 = vector.broadcast %c1_i32_34 : i32 to vector<64x1xi32>
    %79 = arith.addi %14, %78 : vector<64x1xi32>
    %c8_i32_35 = arith.constant 8 : i32
    %80 = vector.broadcast %c8_i32_35 : i32 to vector<64x1xi32>
    %81 = arith.cmpi slt, %79, %80 : vector<64x1xi32>
    %82 = arith.andi %77, %81 : vector<64x1xi1>
    %cst_36 = arith.constant 0.000000e+00 : f32
    %83 = vector.shape_cast %82 : vector<64x1xi1> to vector<64x1xi1>
    %84 = vector.broadcast %83 : vector<64x1xi1> to vector<64x128xi1>
    %85 = vector.broadcast %cst_36 : f32 to vector<64x128xf32>
    %86 = arith.select %84, %63, %85 : vector<64x128xi1>, vector<64x128xf32>
    %c1_i32_37 = arith.constant 1 : i32
    %87 = tpu.dynamic_rotate %12 by %c1_i32_37 dim 0 : vector<64x128xf32>, i32 -> vector<64x128xf32>
    %c0_i32_38 = arith.constant 0 : i32
    %88 = vector.broadcast %c0_i32_38 : i32 to vector<64x1xi32>
    %89 = arith.addi %13, %88 : vector<64x1xi32>
    %c0_i32_39 = arith.constant 0 : i32
    %90 = vector.broadcast %c0_i32_39 : i32 to vector<64x1xi32>
    %91 = arith.cmpi sge, %89, %90 : vector<64x1xi32>
    %c0_i32_40 = arith.constant 0 : i32
    %92 = vector.broadcast %c0_i32_40 : i32 to vector<64x1xi32>
    %93 = arith.addi %13, %92 : vector<64x1xi32>
    %c8_i32_41 = arith.constant 8 : i32
    %94 = vector.broadcast %c8_i32_41 : i32 to vector<64x1xi32>
    %95 = arith.cmpi slt, %93, %94 : vector<64x1xi32>
    %96 = arith.andi %91, %95 : vector<64x1xi1>
    %c-1_i32_42 = arith.constant -1 : i32
    %97 = vector.broadcast %c-1_i32_42 : i32 to vector<64x1xi32>
    %98 = arith.addi %14, %97 : vector<64x1xi32>
    %c0_i32_43 = arith.constant 0 : i32
    %99 = vector.broadcast %c0_i32_43 : i32 to vector<64x1xi32>
    %100 = arith.cmpi sge, %98, %99 : vector<64x1xi32>
    %101 = arith.andi %96, %100 : vector<64x1xi1>
    %c-1_i32_44 = arith.constant -1 : i32
    %102 = vector.broadcast %c-1_i32_44 : i32 to vector<64x1xi32>
    %103 = arith.addi %14, %102 : vector<64x1xi32>
    %c8_i32_45 = arith.constant 8 : i32
    %104 = vector.broadcast %c8_i32_45 : i32 to vector<64x1xi32>
    %105 = arith.cmpi slt, %103, %104 : vector<64x1xi32>
    %106 = arith.andi %101, %105 : vector<64x1xi1>
    %cst_46 = arith.constant 0.000000e+00 : f32
    %107 = vector.shape_cast %106 : vector<64x1xi1> to vector<64x1xi1>
    %108 = vector.broadcast %107 : vector<64x1xi1> to vector<64x128xi1>
    %109 = vector.broadcast %cst_46 : f32 to vector<64x128xf32>
    %110 = arith.select %108, %87, %109 : vector<64x128xi1>, vector<64x128xf32>
    %c63_i32 = arith.constant 63 : i32
    %111 = tpu.dynamic_rotate %12 by %c63_i32 dim 0 : vector<64x128xf32>, i32 -> vector<64x128xf32>
    %c0_i32_47 = arith.constant 0 : i32
    %112 = vector.broadcast %c0_i32_47 : i32 to vector<64x1xi32>
    %113 = arith.addi %13, %112 : vector<64x1xi32>
    %c0_i32_48 = arith.constant 0 : i32
    %114 = vector.broadcast %c0_i32_48 : i32 to vector<64x1xi32>
    %115 = arith.cmpi sge, %113, %114 : vector<64x1xi32>
    %c0_i32_49 = arith.constant 0 : i32
    %116 = vector.broadcast %c0_i32_49 : i32 to vector<64x1xi32>
    %117 = arith.addi %13, %116 : vector<64x1xi32>
    %c8_i32_50 = arith.constant 8 : i32
    %118 = vector.broadcast %c8_i32_50 : i32 to vector<64x1xi32>
    %119 = arith.cmpi slt, %117, %118 : vector<64x1xi32>
    %120 = arith.andi %115, %119 : vector<64x1xi1>
    %c1_i32_51 = arith.constant 1 : i32
    %121 = vector.broadcast %c1_i32_51 : i32 to vector<64x1xi32>
    %122 = arith.addi %14, %121 : vector<64x1xi32>
    %c0_i32_52 = arith.constant 0 : i32
    %123 = vector.broadcast %c0_i32_52 : i32 to vector<64x1xi32>
    %124 = arith.cmpi sge, %122, %123 : vector<64x1xi32>
    %125 = arith.andi %120, %124 : vector<64x1xi1>
    %c1_i32_53 = arith.constant 1 : i32
    %126 = vector.broadcast %c1_i32_53 : i32 to vector<64x1xi32>
    %127 = arith.addi %14, %126 : vector<64x1xi32>
    %c8_i32_54 = arith.constant 8 : i32
    %128 = vector.broadcast %c8_i32_54 : i32 to vector<64x1xi32>
    %129 = arith.cmpi slt, %127, %128 : vector<64x1xi32>
    %130 = arith.andi %125, %129 : vector<64x1xi1>
    %cst_55 = arith.constant 0.000000e+00 : f32
    %131 = vector.shape_cast %130 : vector<64x1xi1> to vector<64x1xi1>
    %132 = vector.broadcast %131 : vector<64x1xi1> to vector<64x128xi1>
    %133 = vector.broadcast %cst_55 : f32 to vector<64x128xf32>
    %134 = arith.select %132, %111, %133 : vector<64x128xi1>, vector<64x128xf32>
    %c57_i32 = arith.constant 57 : i32
    %135 = tpu.dynamic_rotate %12 by %c57_i32 dim 0 : vector<64x128xf32>, i32 -> vector<64x128xf32>
    %c1_i32_56 = arith.constant 1 : i32
    %136 = vector.broadcast %c1_i32_56 : i32 to vector<64x1xi32>
    %137 = arith.addi %13, %136 : vector<64x1xi32>
    %c0_i32_57 = arith.constant 0 : i32
    %138 = vector.broadcast %c0_i32_57 : i32 to vector<64x1xi32>
    %139 = arith.cmpi sge, %137, %138 : vector<64x1xi32>
    %c1_i32_58 = arith.constant 1 : i32
    %140 = vector.broadcast %c1_i32_58 : i32 to vector<64x1xi32>
    %141 = arith.addi %13, %140 : vector<64x1xi32>
    %c8_i32_59 = arith.constant 8 : i32
    %142 = vector.broadcast %c8_i32_59 : i32 to vector<64x1xi32>
    %143 = arith.cmpi slt, %141, %142 : vector<64x1xi32>
    %144 = arith.andi %139, %143 : vector<64x1xi1>
    %c-1_i32_60 = arith.constant -1 : i32
    %145 = vector.broadcast %c-1_i32_60 : i32 to vector<64x1xi32>
    %146 = arith.addi %14, %145 : vector<64x1xi32>
    %c0_i32_61 = arith.constant 0 : i32
    %147 = vector.broadcast %c0_i32_61 : i32 to vector<64x1xi32>
    %148 = arith.cmpi sge, %146, %147 : vector<64x1xi32>
    %149 = arith.andi %144, %148 : vector<64x1xi1>
    %c-1_i32_62 = arith.constant -1 : i32
    %150 = vector.broadcast %c-1_i32_62 : i32 to vector<64x1xi32>
    %151 = arith.addi %14, %150 : vector<64x1xi32>
    %c8_i32_63 = arith.constant 8 : i32
    %152 = vector.broadcast %c8_i32_63 : i32 to vector<64x1xi32>
    %153 = arith.cmpi slt, %151, %152 : vector<64x1xi32>
    %154 = arith.andi %149, %153 : vector<64x1xi1>
    %cst_64 = arith.constant 0.000000e+00 : f32
    %155 = vector.shape_cast %154 : vector<64x1xi1> to vector<64x1xi1>
    %156 = vector.broadcast %155 : vector<64x1xi1> to vector<64x128xi1>
    %157 = vector.broadcast %cst_64 : f32 to vector<64x128xf32>
    %158 = arith.select %156, %135, %157 : vector<64x128xi1>, vector<64x128xf32>
    %c56_i32 = arith.constant 56 : i32
    %159 = tpu.dynamic_rotate %12 by %c56_i32 dim 0 : vector<64x128xf32>, i32 -> vector<64x128xf32>
    %c1_i32_65 = arith.constant 1 : i32
    %160 = vector.broadcast %c1_i32_65 : i32 to vector<64x1xi32>
    %161 = arith.addi %13, %160 : vector<64x1xi32>
    %c0_i32_66 = arith.constant 0 : i32
    %162 = vector.broadcast %c0_i32_66 : i32 to vector<64x1xi32>
    %163 = arith.cmpi sge, %161, %162 : vector<64x1xi32>
    %c1_i32_67 = arith.constant 1 : i32
    %164 = vector.broadcast %c1_i32_67 : i32 to vector<64x1xi32>
    %165 = arith.addi %13, %164 : vector<64x1xi32>
    %c8_i32_68 = arith.constant 8 : i32
    %166 = vector.broadcast %c8_i32_68 : i32 to vector<64x1xi32>
    %167 = arith.cmpi slt, %165, %166 : vector<64x1xi32>
    %168 = arith.andi %163, %167 : vector<64x1xi1>
    %c0_i32_69 = arith.constant 0 : i32
    %169 = vector.broadcast %c0_i32_69 : i32 to vector<64x1xi32>
    %170 = arith.addi %14, %169 : vector<64x1xi32>
    %c0_i32_70 = arith.constant 0 : i32
    %171 = vector.broadcast %c0_i32_70 : i32 to vector<64x1xi32>
    %172 = arith.cmpi sge, %170, %171 : vector<64x1xi32>
    %173 = arith.andi %168, %172 : vector<64x1xi1>
    %c0_i32_71 = arith.constant 0 : i32
    %174 = vector.broadcast %c0_i32_71 : i32 to vector<64x1xi32>
    %175 = arith.addi %14, %174 : vector<64x1xi32>
    %c8_i32_72 = arith.constant 8 : i32
    %176 = vector.broadcast %c8_i32_72 : i32 to vector<64x1xi32>
    %177 = arith.cmpi slt, %175, %176 : vector<64x1xi32>
    %178 = arith.andi %173, %177 : vector<64x1xi1>
    %cst_73 = arith.constant 0.000000e+00 : f32
    %179 = vector.shape_cast %178 : vector<64x1xi1> to vector<64x1xi1>
    %180 = vector.broadcast %179 : vector<64x1xi1> to vector<64x128xi1>
    %181 = vector.broadcast %cst_73 : f32 to vector<64x128xf32>
    %182 = arith.select %180, %159, %181 : vector<64x128xi1>, vector<64x128xf32>
    %c55_i32 = arith.constant 55 : i32
    %183 = tpu.dynamic_rotate %12 by %c55_i32 dim 0 : vector<64x128xf32>, i32 -> vector<64x128xf32>
    %c1_i32_74 = arith.constant 1 : i32
    %184 = vector.broadcast %c1_i32_74 : i32 to vector<64x1xi32>
    %185 = arith.addi %13, %184 : vector<64x1xi32>
    %c0_i32_75 = arith.constant 0 : i32
    %186 = vector.broadcast %c0_i32_75 : i32 to vector<64x1xi32>
    %187 = arith.cmpi sge, %185, %186 : vector<64x1xi32>
    %c1_i32_76 = arith.constant 1 : i32
    %188 = vector.broadcast %c1_i32_76 : i32 to vector<64x1xi32>
    %189 = arith.addi %13, %188 : vector<64x1xi32>
    %c8_i32_77 = arith.constant 8 : i32
    %190 = vector.broadcast %c8_i32_77 : i32 to vector<64x1xi32>
    %191 = arith.cmpi slt, %189, %190 : vector<64x1xi32>
    %192 = arith.andi %187, %191 : vector<64x1xi1>
    %c1_i32_78 = arith.constant 1 : i32
    %193 = vector.broadcast %c1_i32_78 : i32 to vector<64x1xi32>
    %194 = arith.addi %14, %193 : vector<64x1xi32>
    %c0_i32_79 = arith.constant 0 : i32
    %195 = vector.broadcast %c0_i32_79 : i32 to vector<64x1xi32>
    %196 = arith.cmpi sge, %194, %195 : vector<64x1xi32>
    %197 = arith.andi %192, %196 : vector<64x1xi1>
    %c1_i32_80 = arith.constant 1 : i32
    %198 = vector.broadcast %c1_i32_80 : i32 to vector<64x1xi32>
    %199 = arith.addi %14, %198 : vector<64x1xi32>
    %c8_i32_81 = arith.constant 8 : i32
    %200 = vector.broadcast %c8_i32_81 : i32 to vector<64x1xi32>
    %201 = arith.cmpi slt, %199, %200 : vector<64x1xi32>
    %202 = arith.andi %197, %201 : vector<64x1xi1>
    %cst_82 = arith.constant 0.000000e+00 : f32
    %203 = vector.shape_cast %202 : vector<64x1xi1> to vector<64x1xi1>
    %204 = vector.broadcast %203 : vector<64x1xi1> to vector<64x128xi1>
    %205 = vector.broadcast %cst_82 : f32 to vector<64x128xf32>
    %206 = arith.select %204, %183, %205 : vector<64x128xi1>, vector<64x128xf32>
    %207 = tpu.concatenate %38, %62, %86, %110, %12, %134, %158, %182, %206 in 1 : vector<64x128xf32>, vector<64x128xf32>, vector<64x128xf32>, vector<64x128xf32>, vector<64x128xf32>, vector<64x128xf32>, vector<64x128xf32>, vector<64x128xf32>, vector<64x128xf32> -> vector<64x1152xf32>
    %208 = arith.truncf %207 : vector<64x1152xf32> to vector<64x1152xbf16>
    %c0_83 = arith.constant 0 : index
    %c0_84 = arith.constant 0 : index
    %209 = vector.load %arg7[%c0_83, %c0_84] : memref<1152x128xbf16, #tpu.memory_space<vmem>>, vector<1152x128xbf16>
    %cst_85 = arith.constant dense<0.000000e+00> : vector<64x128xf32>
    %210 = tpu.matmul %208, %209, %cst_85 {dimension_numbers = #tpu.dot_dimension_numbers<[1], [0], [0], [1], [0, 0, 1, 1], [], []>} : vector<64x1152xbf16>, vector<1152x128xbf16>, vector<64x128xf32> -> vector<64x128xf32>
    %c0_86 = arith.constant 0 : index
    %c0_87 = arith.constant 0 : index
    %211 = vector.load %arg8[%c0_86, %c0_87] : memref<1x128xf32, #tpu.memory_space<vmem>>, vector<1x128xf32>
    %212 = vector.broadcast %211 : vector<1x128xf32> to vector<64x128xf32>
    %213 = arith.mulf %210, %212 : vector<64x128xf32>
    %c0_88 = arith.constant 0 : index
    %c0_89 = arith.constant 0 : index
    %214 = vector.load %arg9[%c0_88, %c0_89] : memref<1x128xf32, #tpu.memory_space<vmem>>, vector<1x128xf32>
    %215 = vector.broadcast %214 : vector<1x128xf32> to vector<64x128xf32>
    %216 = arith.addf %213, %215 : vector<64x128xf32>
    %cst_90 = arith.constant 0.000000e+00 : f32
    %217 = vector.broadcast %cst_90 : f32 to vector<64x128xf32>
    %218 = arith.maximumf %216, %217 : vector<64x128xf32>
    %cst_91 = arith.constant dense<0.000000e+00> : vector<128xf32>
    %219 = vector.multi_reduction <add>, %218, %cst_91 [0] : vector<64x128xf32> to vector<128xf32>
    %220 = vector.shape_cast %219 : vector<128xf32> to vector<1x128xf32>
    %cst_92 = arith.constant 1.562500e-02 : f32
    %221 = vector.broadcast %cst_92 : f32 to vector<1x128xf32>
    %222 = arith.mulf %220, %221 : vector<1x128xf32>
    %223 = arith.truncf %222 : vector<1x128xf32> to vector<1x128xbf16>
    %c0_93 = arith.constant 0 : index
    %c0_94 = arith.constant 0 : index
    %224 = vector.load %arg10[%c0_93, %c0_94] : memref<128x128xbf16, #tpu.memory_space<vmem>>, vector<128x128xbf16>
    %cst_95 = arith.constant dense<0.000000e+00> : vector<1x128xf32>
    %225 = tpu.matmul %223, %224, %cst_95 {dimension_numbers = #tpu.dot_dimension_numbers<[1], [0], [0], [1], [0, 0, 1, 1], [], []>} : vector<1x128xbf16>, vector<128x128xbf16>, vector<1x128xf32> -> vector<1x128xf32>
    %c0_96 = arith.constant 0 : index
    %c0_97 = arith.constant 0 : index
    %226 = vector.load %arg11[%c0_96, %c0_97] : memref<1x128xf32, #tpu.memory_space<vmem>>, vector<1x128xf32>
    %227 = arith.addf %225, %226 : vector<1x128xf32>
    %cst_98 = arith.constant 0.000000e+00 : f32
    %228 = vector.broadcast %cst_98 : f32 to vector<1x128xf32>
    %229 = arith.maximumf %227, %228 : vector<1x128xf32>
    %230 = arith.truncf %229 : vector<1x128xf32> to vector<1x128xbf16>
    %c0_99 = arith.constant 0 : index
    %c0_100 = arith.constant 0 : index
    %231 = vector.load %arg12[%c0_99, %c0_100] : memref<128x128xbf16, #tpu.memory_space<vmem>>, vector<128x128xbf16>
    %cst_101 = arith.constant dense<0.000000e+00> : vector<1x128xf32>
    %232 = tpu.matmul %230, %231, %cst_101 {dimension_numbers = #tpu.dot_dimension_numbers<[1], [0], [0], [1], [0, 0, 1, 1], [], []>} : vector<1x128xbf16>, vector<128x128xbf16>, vector<1x128xf32> -> vector<1x128xf32>
    %c0_102 = arith.constant 0 : index
    %c0_103 = arith.constant 0 : index
    %233 = vector.load %arg13[%c0_102, %c0_103] : memref<1x128xf32, #tpu.memory_space<vmem>>, vector<1x128xf32>
    %234 = arith.addf %232, %233 : vector<1x128xf32>
    %cst_104 = arith.constant 0.000000e+00 : f32
    %235 = vector.broadcast %cst_104 : f32 to vector<1x128xf32>
    %236 = arith.subf %235, %234 : vector<1x128xf32>
    %237 = math.exp %236 : vector<1x128xf32>
    %cst_105 = arith.constant 1.000000e+00 : f32
    %238 = vector.broadcast %cst_105 : f32 to vector<1x128xf32>
    %239 = arith.addf %238, %237 : vector<1x128xf32>
    %240 = tpu.reciprocal %239 {approx = true} : vector<1x128xf32> -> vector<1x128xf32>
    %241 = vector.broadcast %240 : vector<1x128xf32> to vector<64x128xf32>
    %242 = arith.mulf %218, %241 : vector<64x128xf32>
    %243 = arith.truncf %242 : vector<64x128xf32> to vector<64x128xbf16>
    %c0_106 = arith.constant 0 : index
    %c0_107 = arith.constant 0 : index
    %244 = vector.load %arg14[%c0_106, %c0_107] : memref<128x128xbf16, #tpu.memory_space<vmem>>, vector<128x128xbf16>
    %cst_108 = arith.constant dense<0.000000e+00> : vector<64x128xf32>
    %245 = tpu.matmul %243, %244, %cst_108 {dimension_numbers = #tpu.dot_dimension_numbers<[1], [0], [0], [1], [0, 0, 1, 1], [], []>} : vector<64x128xbf16>, vector<128x128xbf16>, vector<64x128xf32> -> vector<64x128xf32>
    %c0_109 = arith.constant 0 : index
    %c0_110 = arith.constant 0 : index
    %246 = vector.load %arg15[%c0_109, %c0_110] : memref<1x128xf32, #tpu.memory_space<vmem>>, vector<1x128xf32>
    %247 = vector.broadcast %246 : vector<1x128xf32> to vector<64x128xf32>
    %248 = arith.mulf %245, %247 : vector<64x128xf32>
    %c0_111 = arith.constant 0 : index
    %c0_112 = arith.constant 0 : index
    %249 = vector.load %arg16[%c0_111, %c0_112] : memref<1x128xf32, #tpu.memory_space<vmem>>, vector<1x128xf32>
    %250 = vector.broadcast %249 : vector<1x128xf32> to vector<64x128xf32>
    %251 = arith.addf %248, %250 : vector<64x128xf32>
    %c0_113 = arith.constant 0 : index
    %c0_114 = arith.constant 0 : index
    %c0_115 = arith.constant 0 : index
    %252 = vector.load %arg1[%c0_113, %c0_114, %c0_115] : memref<1x64x128xf32, #tpu.memory_space<vmem>>, vector<1x64x128xf32>
    %253 = vector.shape_cast %252 : vector<1x64x128xf32> to vector<64x128xf32>
    %254 = arith.addf %251, %253 : vector<64x128xf32>
    %cst_116 = arith.constant 0.000000e+00 : f32
    %255 = vector.broadcast %cst_116 : f32 to vector<64x128xf32>
    %256 = arith.maximumf %254, %255 : vector<64x128xf32>
    %c0_117 = arith.constant 0 : index
    %c0_118 = arith.constant 0 : index
    %c0_119 = arith.constant 0 : index
    %257 = vector.load %arg17[%c0_117, %c0_118, %c0_119] : memref<1x64x128xf32, #tpu.memory_space<vmem>>, vector<1x64x128xf32>
    %258 = vector.shape_cast %257 : vector<1x64x128xf32> to vector<64x128xf32>
    %259 = vector.shape_cast %256 : vector<64x128xf32> to vector<1x64x128xf32>
    tpu.vector_store %arg17[%c0_117, %c0_118, %c0_119], %259 {strides = array<i32>} : memref<1x64x128xf32, #tpu.memory_space<vmem>>, vector<1x64x128xf32>,
    return
  }
  func.func @transform_0(%arg0: i32) -> (i32, i32, i32) {
    %c0_i32 = arith.constant 0 : i32
    %c0_i32_0 = arith.constant 0 : i32
    %c0_i32_1 = arith.constant 0 : i32
    return %arg0, %c0_i32, %c0_i32_0 : i32, i32, i32
  }
  func.func @transform_1(%arg0: i32) -> (i32, i32) {
    %c0_i32 = arith.constant 0 : i32
    %c0_i32_0 = arith.constant 0 : i32
    %c0_i32_1 = arith.constant 0 : i32
    return %c0_i32, %c0_i32_0 : i32, i32
  }
  func.func @transform_2(%arg0: i32) -> (i32, i32) {
    %c0_i32 = arith.constant 0 : i32
    %c0_i32_0 = arith.constant 0 : i32
    %c0_i32_1 = arith.constant 0 : i32
    return %c0_i32, %c0_i32_0 : i32, i32
  }
  func.func @transform_3(%arg0: i32) -> (i32, i32) {
    %c0_i32 = arith.constant 0 : i32
    %c0_i32_0 = arith.constant 0 : i32
    %c0_i32_1 = arith.constant 0 : i32
    return %c0_i32, %c0_i32_0 : i32, i32
  }
  func.func @transform_4(%arg0: i32) -> (i32, i32) {
    %c0_i32 = arith.constant 0 : i32
    %c0_i32_0 = arith.constant 0 : i32
    %c0_i32_1 = arith.constant 0 : i32
    return %c0_i32, %c0_i32_0 : i32, i32
  }
  func.func @transform_5(%arg0: i32) -> (i32, i32) {
    %c0_i32 = arith.constant 0 : i32
    %c0_i32_0 = arith.constant 0 : i32
    %c0_i32_1 = arith.constant 0 : i32
    return %c0_i32, %c0_i32_0 : i32, i32
  }
  func.func @transform_6(%arg0: i32) -> (i32, i32) {
    %c0_i32 = arith.constant 0 : i32
    %c0_i32_0 = arith.constant 0 : i32
    %c0_i32_1 = arith.constant 0 : i32
    return %c0_i32, %c0_i32_0 : i32, i32
  }
  func.func @transform_7(%arg0: i32) -> (i32, i32) {
    %c0_i32 = arith.constant 0 : i32
    %c0_i32_0 = arith.constant 0 : i32
    %c0_i32_1 = arith.constant 0 : i32
    return %c0_i32, %c0_i32_0 : i32, i32
  }
  func.func @transform_8(%arg0: i32) -> (i32, i32) {
    %c0_i32 = arith.constant 0 : i32
    %c0_i32_0 = arith.constant 0 : i32
    %c0_i32_1 = arith.constant 0 : i32
    return %c0_i32, %c0_i32_0 : i32, i32
  }
  func.func @transform_9(%arg0: i32) -> (i32, i32) {
    %c0_i32 = arith.constant 0 : i32
    %c0_i32_0 = arith.constant 0 : i32
    %c0_i32_1 = arith.constant 0 : i32
    return %c0_i32, %c0_i32_0 : i32, i32
  }
  func.func @transform_10(%arg0: i32) -> (i32, i32) {
    %c0_i32 = arith.constant 0 : i32
    %c0_i32_0 = arith.constant 0 : i32
    %c0_i32_1 = arith.constant 0 : i32
    return %c0_i32, %c0_i32_0 : i32, i32
  }
  func.func @transform_11(%arg0: i32) -> (i32, i32) {
    %c0_i32 = arith.constant 0 : i32
    %c0_i32_0 = arith.constant 0 : i32
    %c0_i32_1 = arith.constant 0 : i32
    return %c0_i32, %c0_i32_0 : i32, i32
  }
  func.func @transform_12(%arg0: i32) -> (i32, i32) {
    %c0_i32 = arith.constant 0 : i32
    %c0_i32_0 = arith.constant 0 : i32
    %c0_i32_1 = arith.constant 0 : i32
    return %c0_i32, %c0_i32_0 : i32, i32
  }
  func.func @transform_13(%arg0: i32) -> (i32, i32) {
    %c0_i32 = arith.constant 0 : i32
    %c0_i32_0 = arith.constant 0 : i32
    %c0_i32_1 = arith.constant 0 : i32
    return %c0_i32, %c0_i32_0 : i32, i32
  }
  func.func @transform_14(%arg0: i32) -> (i32, i32) {
    %c0_i32 = arith.constant 0 : i32
    %c0_i32_0 = arith.constant 0 : i32
    %c0_i32_1 = arith.constant 0 : i32
    return %c0_i32, %c0_i32_0 : i32, i32
  }
  func.func @transform_15(%arg0: i32) -> (i32, i32) {
    %c0_i32 = arith.constant 0 : i32
    %c0_i32_0 = arith.constant 0 : i32
    %c0_i32_1 = arith.constant 0 : i32
    return %c0_i32, %c0_i32_0 : i32, i32
  }
  func.func @transform_16(%arg0: i32) -> (i32, i32, i32) {
    %c0_i32 = arith.constant 0 : i32
    %c0_i32_0 = arith.constant 0 : i32
    %c0_i32_1 = arith.constant 0 : i32
    return %arg0, %c0_i32, %c0_i32_0 : i32, i32, i32
  }
}

</mosaic_0001>

<bundles_post_ra>
// kernel: se_bottleneck.1
= control target key start
LH: loop header
LB: loop body
LE: loop exit
PB: predicated region body
PF: predicated region fallthrough
CT: control target
= control target key end

     0   :  { %s3428_s21 = smov 0   ;;  %s5075_s0 = inlined_call_operand.vmem [shape: f32[2,64,128], index: 0, kind: input, shape index: {}]   ;;  %s5076_s1 = inlined_call_operand.vmem [shape: s32[64,1], index: 1, kind: input, shape index: {}]   ;;  %s5077_s2 = inlined_call_operand.vmem [shape: s32[64,1], index: 2, kind: input, shape index: {}]   ;;  %s5078_s3 = inlined_call_operand.vmem [shape: bf16[128,128], index: 3, kind: input, shape index: {}]   ;;  %s5079_s4 = inlined_call_operand.vmem [shape: f32[1,128], index: 4, kind: input, shape index: {}]   ;;  %s5080_s5 = inlined_call_operand.vmem [shape: f32[1,128], index: 5, kind: input, shape index: {}]   ;;  %s5081_s6 = inlined_call_operand.vmem [shape: bf16[1152,128], index: 6, kind: input, shape index: {}]   ;;  %s5082_s7 = inlined_call_operand.vmem [shape: f32[1,128], index: 7, kind: input, shape index: {}]   ;;  %s5083_s8 = inlined_call_operand.vmem [shape: f32[1,128], index: 8, kind: input, shape index: {}]   ;;  %s5084_s9 = inlined_call_operand.vmem [shape: bf16[128,128], index: 9, kind: input, shape index: {}]   ;;  %s5085_s10 = inlined_call_operand.vmem [shape: f32[1,128], index: 10, kind: input, shape index: {}]   ;;  %s5086_s11 = inlined_call_operand.vmem [shape: bf16[128,128], index: 11, kind: input, shape index: {}]   ;;  %s5087_s12 = inlined_call_operand.vmem [shape: f32[1,128], index: 12, kind: input, shape index: {}]   ;;  %s5088_s13 = inlined_call_operand.vmem [shape: bf16[128,128], index: 13, kind: input, shape index: {}]   ;;  %s5089_s14 = inlined_call_operand.vmem [shape: f32[1,128], index: 14, kind: input, shape index: {}]   ;;  %s5090_s15 = inlined_call_operand.vmem [shape: f32[1,128], index: 15, kind: input, shape index: {}]   ;;  %s5091_s16 = inlined_call_operand.vmem [shape: f32[2,64,128], index: 16, kind: output, shape index: {}]  }
   0x1   :  { %5151 = sst [smem:[#allocation2_spill]] %s5075_s0 }
   0x2 LB: > { %s2667_s22 = sadd.s32 4294967295, %s3340_s21   ;;  %p2671_p0 = scmp.ge.s32.totalorder %s3340_s21, 1  ;;  %s3340_s21 = sphi %s3428_s21, %s26_s21  }
   0x3   : > { %p462_p1 = scmp.lt.s32.totalorder %s3340_s21, 3 }
   0x5   : > { %p463_p2 = pnand %p2671_p0, %p462_p1 }
   0x6   : > { %p3573_p3 = scmp.lt.s32.totalorder (!%p463_p2), %s2667_s22, 1  ;;  %s5167_s19 = sld [smem:[#allocation2_spill]] (!%p463_p2) }
   0x7   : > { %466 = sbr.rel (%p463_p2) target bundleno = 1069 (0x42d), region = 84 }
   0xc   : > { %v3199_v0 = vld [vmem:[%s5078_s3 + $0x38] sm:$0xff]  ;;  %v3442_v1 = vld [vmem:[%s5076_s1 + $0x20] sm:$0xff]  ;;  %v3342_v2 = vmov 0   ;;  %v3455_v5 = vld [vmem:[%s5076_s1 + $0x10] sm:$0xff]  ;;  %v5152_v13 = vmov 0  ;;  %v5159_v33 = vmov 0 }
   0xd   : > { %3315 = vset.pattern.permute.xlu2 %v3342_v2  ;;  %3314 = vset.pattern.permute.xlu1 %v3342_v2  ;;  %v3449_v3 = vld [vmem:[%s5077_s2 + $0x20] sm:$0xff]  ;;  %v698_v4 = vadd.s32 4294967295, %v3442_v1  ;;  %v3460_v6 = vld [vmem:[%s5077_s2 + $0x10] sm:$0xff]  ;;  %v696_v8 = vadd.s32 4294967295, %v3455_v5  ;;  %v3493_v15 = vld [vmem:[%s5076_s1 + $0x28] sm:$0xff]  ;;  %v5161_v38 = vmov 0 }
   0xe   : > { %598 = vmatpush.bf16.msra.mxu0 %v3199_v0  ;;  %3313 = vset.pattern.permute.xlu0 %v3342_v2  ;;  %v3198_v7 = vld [vmem:[%s5078_s3 + $0x30] sm:$0xff]  ;;  %vm5093_vm0 = vcmp.ge.s32.totalorder %v3449_v3, 0  ;;  %v3469_v9 = vadd.s32 4294967295, %v3460_v6  ;;  %v3474_v10 = vld [vmem:[%s5076_s1] sm:$0xff]  ;;  %vm5092_vm3 = vcmp.lt.s32.totalorder %v3449_v3, 8  ;;  %v3197_v16 = vld [vmem:[%s5078_s3 + $0x28] sm:$0xff] }
   0xf   : > { %v3479_v11 = vld [vmem:[%s5077_s2] sm:$0xff]  ;;  %vm706_vm1 = vcmp.ge.s32.totalorder %v698_v4, 0  ;;  %vm714_vm2 = vcmp.lt.s32.totalorder %v698_v4, 8  ;;  %v694_v12 = vadd.s32 4294967295, %v3474_v10  ;;  %vm704_vm5 = vcmp.ge.s32.totalorder %v696_v8, 0  ;;  %v3510_v18 = vld [vmem:[%s5076_s1 + $0x18] sm:$0xff] }
  0x10   : > { %vm3483_vm4 = vmand %vm706_vm1, %vm714_vm2  ;;  %vm712_vm6 = vcmp.lt.s32.totalorder %v696_v8, 8  ;;  %v3488_v14 = vadd.s32 4294967295, %v3479_v11  ;;  %vm5096_vm8 = vcmp.ge.s32.totalorder %v3469_v9, 0  ;;  %vm5094_vm10 = vcmp.lt.s32.totalorder %v3469_v9, 8  ;;  %v3520_v21 = vld [vmem:[%s5077_s2 + $0x18] sm:$0xff]  ;;  %v3530_v22 = vld [vmem:[%s5077_s2 + $0x28] sm:$0xff] }
  0x11   : > { %v5153_v13 = vsel %vm3483_vm4, 4294967295, %v5152_v13  ;;  %vm826_vm7 = vmand %vm3483_vm4, %vm5093_vm0  ;;  %v699_v17 = vadd.s32 4294967295, %v3493_v15  ;;  %vm702_vm12 = vcmp.ge.s32.totalorder %v694_v12, 0  ;;  %vm710_vm13 = vcmp.lt.s32.totalorder %v694_v12, 8  ;;  %v3539_v24 = vld [vmem:[%s5076_s1 + $0x8] sm:$0xff]  ;;  %v3196_v27 = vld [vmem:[%s5078_s3 + $0x20] sm:$0xff] }
  0x12   : > { %599 = vmatpush.bf16.msra.mxu0 %v3198_v7  ;;  %vm842_vm9 = vmand %vm826_vm7, %vm5092_vm3  ;;  %vm5106_vm15 = vcmp.ge.s32.totalorder %v3488_v14, 0  ;;  %vm5099_vm2 = vcmp.lt.s32.totalorder %v3488_v14, 8  ;;  %v697_v23 = vadd.s32 4294967295, %v3510_v18  ;;  %v3550_v28 = vadd.s32 4294967295, %v3520_v21  ;;  %v3555_v29 = vld [vmem:[%s5077_s2 + $0x8] sm:$0xff]  ;;  %v3569_v31 = vld [vmem:[%s5076_s1 + $0x30] sm:$0xff] }
  0x13   : > { %v850_v19 = vsel %vm842_vm9, 1, %v3342_v2  ;;  %vm3513_vm11 = vmand %vm704_vm5, %vm712_vm6  ;;  %vm707_vm6 = vcmp.ge.s32.totalorder %v699_v17, 0  ;;  %vm715_vm7 = vcmp.lt.s32.totalorder %v699_v17, 8  ;;  %v695_v30 = vadd.s32 4294967295, %v3539_v24  ;;  %v3195_v35 = vld [vmem:[%s5078_s3 + $0x18] sm:$0xff]  ;;  %s5329_s22 = smov (!%p3573_p3, %s2667_s22), 1 }
  0x14   : > { %867 = vperm.xlu2 %3315, %v850_v19   ;;  %vm744_vm14 = vmand %vm3513_vm11, %vm5096_vm8  ;;  %vm713_vm3 = vcmp.lt.s32.totalorder %v697_v23, 8  ;;  %v3583_v34 = vadd.s32 4294967295, %v3555_v29  ;;  %v700_v36 = vadd.s32 4294967295, %v3569_v31  ;;  %v3616_v39 = vld [vmem:[%s5077_s2 + $0x30] sm:$0xff]  ;;  %v3625_v41 = vadd.s32 4294967295, %v3530_v22  ;;  %v3635_v44 = vld [vmem:[%s5076_s1 + $0x38] sm:$0xff] }
  0x15   : > { %vm760_vm1 = vmand %vm744_vm14, %vm5094_vm10  ;;  %vm5097_vm14 = vcmp.lt.s32.totalorder %v3530_v22, 8  ;;  %vm711_vm8 = vcmp.lt.s32.totalorder %v695_v30, 8  ;;  %v3194_v40 = vld [vmem:[%s5078_s3 + $0x10] sm:$0xff]  ;;  %v3643_v45 = vadd.s32 4294967295, %v3449_v3  ;;  %v3648_v46 = vld [vmem:[%s5077_s2 + $0x38] sm:$0xff]  ;;  %s3190_s29 = sshll.u32 %s5329_s22, 6 }
  0x16   : > { %v768_v25 = vsel %vm760_vm1, 1, %v3342_v2  ;;  %vm3542_vm5 = vmand %vm702_vm12, %vm710_vm13  ;;  %600 = vmatpush.bf16.msra.mxu0 %v3197_v16  ;;  %vm5095_vm12 = vcmp.ge.s32.totalorder %v3530_v22, 0  ;;  %v3193_v49 = vld [vmem:[%s5078_s3 + $0x8] sm:$0xff]  ;;  %v701_v50 = vadd.s32 4294967295, %v3635_v44  ;;  %v3670_v51 = vadd.s32 4294967295, %v3648_v46  ;;  %s3677_s20 = scalar_lea.vmem %s5167_s19, %s3190_s29  ;;  %v3192_v53 = vld [vmem:[%s5078_s3] sm:$0xff]  ;;  %s5055_s26 = scalar_lea.vmem %s5091_s16, %s3190_s29 }
  0x17   : > { %781 = vperm.xlu1 %3314, %v768_v25   ;;  %vm742_vm9 = vmand %vm3542_vm5, %vm5106_vm15  ;;  %v3692_v54 = vadd.s32 4294967295, %v3616_v39  ;;  %v522_v55 = vld [vmem:[%s3677_s20] sm:$0xff]  ;;  %v523_v56 = vld [vmem:[%s3677_s20 + $0x8] sm:$0xff]  ;;  %v5168_v59 = vmov 0  ;;  %v3714_v61 = vadd.s32 1, %v3555_v29  ;;  %v3740_v0 = vadd.s32 1, %v3479_v11 }
  0x18   : > { %vm758_vm13 = vmand %vm742_vm9, %vm5099_vm2  ;;  %vm705_vm9 = vcmp.ge.s32.totalorder %v697_v23, 0  ;;  %vm716_vm2 = vcmp.lt.s32.totalorder %v700_v36, 8  ;;  %vm5111_vm15 = vcmp.ge.s32.totalorder %v3670_v51, 0  ;;  %v530_v60 = vpack.c.bf16 %v523_v56, %v522_v55  ;;  %v524_v19 = vld [vmem:[%s3677_s20 + $0x10] sm:$0xff]  ;;  %v525_v23 = vld [vmem:[%s3677_s20 + $0x18] sm:$0xff] }
  0x19   : > { %v766_v32 = vsel %vm758_vm13, 1, %v3342_v2  ;;  %vm3578_vm1 = vmand %vm707_vm6, %vm715_vm7  ;;  %vm5098_vm13 = vcmp.ge.s32.totalorder %v3550_v28, 0  ;;  %vm5100_vm7 = vcmp.lt.s32.totalorder %v3550_v28, 8  ;;  %v3752_v7 = vadd.s32 1, %v3460_v6  ;;  %v528_v48 = vld [vmem:[%s3677_s20 + $0x30] sm:$0xff] }
  0x1a   : > { %v5160_v33 = vsel %vm3578_vm1, 4294967295, %v5159_v33  ;;  %775 = vperm.xlu0 %3313, %v766_v32   ;;  %601 = vmatpush.bf16.msra.mxu0 %v3196_v27  ;;  %vm827_vm0 = vmand %vm3578_vm1, %vm5095_vm12  ;;  %vm703_vm12 = vcmp.ge.s32.totalorder %v695_v30, 0  ;;  %v5170_v8 = vmov 0  ;;  %v3762_v12 = vadd.s32 1, %v3520_v21 }
  0x1b   : > { %vm843_vm6 = vmand %vm827_vm0, %vm5097_vm14  ;;  %vm5101_vm14 = vcmp.ge.s32.totalorder %v3583_v34, 0  ;;  %v531_v27 = vpack.c.bf16 %v525_v23, %v524_v19  ;;  %v3901_v43 = vadd.s32 1, %v3616_v39  ;;  %v529_v19 = vld [vmem:[%s3677_s20 + $0x38] sm:$0xff] }
  0x1c   : > { %v851_v37 = vsel %vm843_vm6, 1, %v3342_v2  ;;  %vm3598_vm10 = vmand %vm705_vm9, %vm713_vm3  ;;  %vm5103_vm9 = vcmp.lt.s32.totalorder %v3583_v34, 8 }
  0x1d   : > { %v5162_v38 = vsel %vm3598_vm10, 4294967295, %v5161_v38  ;;  %870 = vperm.xlu2 %3315, %v851_v37   ;;  %vm745_vm0 = vmand %vm3598_vm10, %vm5098_vm13  ;;  %vm708_vm13 = vcmp.ge.s32.totalorder %v700_v36, 0  ;;  %v5178_v36 = vmov 0  ;;  %v3825_v37 = vadd.s32 1, %v3449_v3 }
  0x1e   : > { %vm761_vm3 = vmand %vm745_vm0, %vm5100_vm7  ;;  %602 = vmatpush.bf16.msra.mxu0 %v3195_v35  ;;  %vm5102_vm7 = vcmp.ge.s32.totalorder %v3616_v39, 0 }
  0x1f   : > { %v769_v42 = vsel %vm761_vm3, 1, %v3342_v2  ;;  %vm3628_vm6 = vmand %vm703_vm12, %vm711_vm8  ;;  %vm5104_vm12 = vcmp.lt.s32.totalorder %v3616_v39, 8 }
  0x20   : > { %784 = vperm.xlu1 %3314, %v769_v42   ;;  %vm743_vm0 = vmand %vm3628_vm6, %vm5101_vm14  ;;  %vm5105_vm14 = vcmp.ge.s32.totalorder %v3625_v41, 0  ;;  %v3837_v42 = vadd.s32 1, %v3530_v22 }
  0x21   : > { %vm759_vm8 = vmand %vm743_vm0, %vm5103_vm9  ;;  %vm5109_vm9 = vcmp.lt.s32.totalorder %v3643_v45, 8 }
  0x22   : > { %v767_v47 = vsel %vm759_vm8, 1, %v3342_v2  ;;  %603 = vmatpush.bf16.msra.mxu0 %v3194_v40  ;;  %vm3655_vm3 = vmand %vm708_vm13, %vm716_vm2  ;;  %vm5108_vm8 = vcmp.lt.s32.totalorder %v3625_v41, 8  ;;  %vm5110_vm13 = vcmp.ge.s32.totalorder %v3643_v45, 0 }
  0x23   : > { %778 = vperm.xlu0 %3313, %v767_v47   ;;  %vm828_vm0 = vmand %vm3655_vm3, %vm5102_vm7 }
  0x24   : > { %vm844_vm2 = vmand %vm828_vm0, %vm5104_vm12  ;;  %vm717_vm12 = vcmp.lt.s32.totalorder %v701_v50, 8 }
  0x25   : > { %v852_v52 = vsel %vm844_vm2, 1, %v3342_v2  ;;  %vm747_vm7 = vmand %vm3578_vm1, %vm5105_vm14  ;;  %vm709_vm2 = vcmp.ge.s32.totalorder %v701_v50, 0  ;;  %v526_v50 = vld [vmem:[%s3677_s20 + $0x20] sm:$0xff] }
  0x26   : > { %873 = vperm.xlu2 %3315, %v852_v52   ;;  %vm763_vm0 = vmand %vm747_vm7, %vm5108_vm8  ;;  %604 = vmatpush.bf16.msra.mxu0 %v3193_v49  ;;  %vm5113_vm7 = vcmp.lt.s32.totalorder %v3670_v51, 8  ;;  %v5182_v49 = vmov 0  ;;  %v527_v52 = vld [vmem:[%s3677_s20 + $0x28] sm:$0xff] }
  0x27   : > { %v771_v57 = vsel %vm763_vm0, 1, %v3342_v2  ;;  %vm746_vm14 = vmand %vm3483_vm4, %vm5110_vm13  ;;  %vm5118_vm0 = vcmp.ge.s32.totalorder %v3692_v54, 0  ;;  %vm5116_vm13 = vcmp.lt.s32.totalorder %v3648_v46, 8  ;;  %vm5117_vm4 = vcmp.ge.s32.totalorder %v3714_v61, 0 }
  0x28   : > { %790 = vperm.xlu1 %3314, %v771_v57   ;;  %vm762_vm1 = vmand %vm746_vm14, %vm5109_vm9  ;;  %vm5114_vm9 = vcmp.lt.s32.totalorder %v3692_v54, 8 }
  0x29   : > { %v770_v58 = vsel %vm762_vm1, 1, %v3342_v2  ;;  %vm3708_vm8 = vmand %vm709_vm2, %vm717_vm12  ;;  %vm5115_vm12 = vcmp.ge.s32.totalorder %v3648_v46, 0 }
  0x2a   : > { %v5169_v59 = vsel %vm3708_vm8, 4294967295, %v5168_v59  ;;  %605 = vmatpush.bf16.msra.mxu0 %v3192_v53  ;;  %vm749_vm14 = vmand %vm3708_vm8, %vm5111_vm15 }
  0x2b   : > { %787 = vperm.xlu0 %3313, %v770_v58   ;;  %vm765_vm1 = vmand %vm749_vm14, %vm5113_vm7 }
  0x2c   : > { %v773_v62 = vsel %vm765_vm1, 1, %v3342_v2  ;;  %vm748_vm2 = vmand %vm3655_vm3, %vm5118_vm0  ;;  %vm5119_vm1 = vcmp.lt.s32.totalorder %v3714_v61, 8  ;;  %vm5122_vm0 = vcmp.lt.s32.totalorder %v3740_v0, 8 }
  0x2d   : > { %vm764_vm15 = vmand %vm748_vm2, %vm5114_vm9  ;;  %606 = vmatmul.bf16.vlgmr.msra.gmra.mxu0 %v530_v60  ;;  %vm999_vm2 = vcmp.ge.s32.totalorder %v3474_v10, 0  ;;  %vm1007_vm9 = vcmp.lt.s32.totalorder %v3474_v10, 8  ;;  %v3916_v60 = vadd.s32 1, %v3648_v46 }
  0x2e   : > { %796 = vperm.xlu2 %3315, %v773_v62   ;;  %v772_v63 = vsel %vm764_vm15, 1, %v3342_v2  ;;  %vm829_vm14 = vmand %vm3708_vm8, %vm5115_vm12  ;;  %vm5124_vm8 = vcmp.lt.s32.totalorder %v3752_v7, 8 }
  0x2f   : > { %vm845_vm7 = vmand %vm829_vm14, %vm5116_vm13  ;;  %vm5125_vm13 = vcmp.ge.s32.totalorder %v3740_v0, 0 }
  0x30   : > { %793 = vperm.xlu1 %3314, %v772_v63   ;;  %v853_v4 = vsel %vm845_vm7, 1, %v3342_v2  ;;  %vm928_vm15 = vmand %vm3628_vm6, %vm5117_vm4  ;;  %vm5172_vm7 = vcmp.ge.s32.totalorder %v3488_v14, 0  ;;  %v5196_v63 = vmov 0 }
  0x31   : > { %vm944_vm12 = vmand %vm928_vm15, %vm5119_vm1  ;;  %vm5173_vm15 = vcmp.lt.s32.totalorder %v3488_v14, 8 }
  0x32   : > { %vm3756_vm14 = vmand %vm999_vm2, %vm1007_vm9  ;;  %vm5123_vm2 = vcmp.ge.s32.totalorder %v3752_v7, 0  ;;  %v952_v16 = vsel %vm944_vm12, 1, %v3342_v2  ;;  %vm5127_vm12 = vcmp.lt.s32.totalorder %v3762_v12, 8 }
  0x33   : > { %v5171_v8 = vsel %vm3756_vm14, 4294967295, %v5170_v8  ;;  %876 = vperm.xlu0 %3313, %v853_v4   ;;  %vm1023_vm4 = vmand %vm3756_vm14, %vm5172_vm7  ;;  %vm5126_vm14 = vcmp.ge.s32.totalorder %v3762_v12, 0 }
  0x34   : > { %vm1031_vm9 = vmand %vm1023_vm4, %vm5173_vm15 }
  0x35   : > { %v1039_v17 = vsel %vm1031_vm9, 1, %v3342_v2  ;;  %vm927_vm1 = vmand %vm3542_vm5, %vm5125_vm13  ;;  %vm1000_vm9 = vcmp.ge.s32.totalorder %v3539_v24, 0  ;;  %vm5176_vm13 = vcmp.ge.s32.totalorder %v3583_v34, 0 }
  0x36   : > { %1048 = vperm.xlu2 %3315, %v1039_v17   ;;  %vm943_vm7 = vmand %vm927_vm1, %vm5122_vm0  ;;  %vm1008_vm1 = vcmp.lt.s32.totalorder %v3539_v24, 8 }
  0x37   : > { %vm929_vm4 = vmand %vm3513_vm11, %vm5123_vm2  ;;  %v951_v25 = vsel %vm943_vm7, 1, %v3342_v2 }
  0x38   : > { %963 = vperm.xlu1 %3314, %v952_v16   ;;  %vm945_vm15 = vmand %vm929_vm4, %vm5124_vm8  ;;  %vm1002_vm4 = vcmp.ge.s32.totalorder %v3510_v18, 0  ;;  %vm1010_vm8 = vcmp.lt.s32.totalorder %v3510_v18, 8 }
  0x39   : > { %vm930_vm0 = vmand %vm3598_vm10, %vm5126_vm14  ;;  %v953_v35 = vsel %vm945_vm15, 1, %v3342_v2  ;;  %vm1001_vm15 = vcmp.ge.s32.totalorder %v3455_v5, 0 }
  0x3a   : > { %vm946_vm2 = vmand %vm930_vm0, %vm5127_vm12  ;;  %vm5177_vm0 = vcmp.lt.s32.totalorder %v3583_v34, 8 }
  0x3b   : > { %960 = vperm.xlu0 %3313, %v951_v25   ;;  %v954_v30 = vsel %vm946_vm2, 1, %v3342_v2  ;;  %vm3801_vm7 = vmand %vm1000_vm9, %vm1008_vm1  ;;  %vm5129_vm9 = vcmp.ge.s32.totalorder %v3479_v11, 0  ;;  %vm5180_vm1 = vcmp.ge.s32.totalorder %v3550_v28, 0  ;;  %v533_v25 = vpack.c.bf16 %v529_v19, %v528_v48 }
  0x3c   : > { %vm1024_vm14 = vmand %vm3801_vm7, %vm5176_vm13  ;;  %vm5130_vm13 = vcmp.lt.s32.totalorder %v3479_v11, 8  ;;  %v5276_v19 = vmov 0 }
  0x3d   : > { %vm1032_vm12 = vmand %vm1024_vm14, %vm5177_vm0  ;;  %611 = vmatmul.bf16.gmra.mxu0 %v531_v27  ;;  %v5208_v27 = vmov 0 }
  0x3e   : > { %969 = vperm.xlu2 %3315, %v954_v30   ;;  %vm3814_vm2 = vmand %vm1002_vm4, %vm1010_vm8  ;;  %v1040_v40 = vsel %vm1032_vm12, 1, %v3342_v2  ;;  %vm5181_vm8 = vcmp.lt.s32.totalorder %v3550_v28, 8  ;;  %vm1009_vm4 = vcmp.lt.s32.totalorder %v3455_v5, 8 }
  0x3f   : > { %v5179_v36 = vsel %vm3814_vm2, 4294967295, %v5178_v36  ;;  %vm1026_vm10 = vmand %vm3814_vm2, %vm5180_vm1  ;;  %vm5132_vm1 = vcmp.ge.s32.totalorder %v3825_v37, 0  ;;  %vm5135_vm2 = vcmp.lt.s32.totalorder %v3837_v42, 8 }
  0x40   : > { %966 = vperm.xlu1 %3314, %v953_v35   ;;  %vm1034_vm14 = vmand %vm1026_vm10, %vm5181_vm8  ;;  %vm5184_vm8 = vcmp.ge.s32.totalorder %v3469_v9, 0  ;;  %v1151_v35 = vadd.s32 1, %v3474_v10  ;;  %v1152_v10 = vadd.s32 1, %v3539_v24 }
  0x41   : > { %vm822_vm0 = vmand %vm3542_vm5, %vm5129_vm9  ;;  %vm5133_vm9 = vcmp.lt.s32.totalorder %v3825_v37, 8  ;;  %v1042_v26 = vsel %vm1034_vm14, 1, %v3342_v2  ;;  %vm5137_vm14 = vcmp.ge.s32.totalorder %v3555_v29, 0 }
  0x42   : > { %vm838_vm12 = vmand %vm822_vm0, %vm5130_vm13  ;;  %vm5185_vm0 = vcmp.lt.s32.totalorder %v3469_v9, 8 }
  0x43   : > { %1051 = vperm.xlu0 %3313, %v1040_v40   ;;  %v846_v47 = vsel %vm838_vm12, 1, %v3342_v2  ;;  %vm3842_vm10 = vmand %vm1001_vm15, %vm1009_vm4  ;;  %vm5134_vm12 = vcmp.ge.s32.totalorder %v3837_v42, 0  ;;  %vm5186_vm15 = vnez %v5153_v13  ;;  %v532_v13 = vpack.c.bf16 %v527_v52, %v526_v50 }
  0x44   : > { %v5183_v49 = vsel %vm3842_vm10, 4294967295, %v5182_v49  ;;  %vm1025_vm5 = vmand %vm3842_vm10, %vm5184_vm8  ;;  %vm5223_vm10 = vcmp.ge.s32.totalorder %v3488_v14, 0 }
  0x45   : > { %vm1033_vm13 = vmand %vm1025_vm5, %vm5185_vm0  ;;  %vm5189_vm5 = vnez %v5160_v33  ;;  %v5190_v33 = vmov 0 }
  0x46   : > { %855 = vperm.xlu2 %3315, %v846_v47   ;;  %vm931_vm4 = vmand %vm5186_vm15, %vm5132_vm1  ;;  %v1041_v55 = vsel %vm1033_vm13, 1, %v3342_v2  ;;  %vm5136_vm15 = vcmp.lt.s32.totalorder %v3555_v29, 8  ;;  %v5216_v47 = vmov 0 }
  0x47   : > { %vm3865_vm8 = vmand %vm931_vm4, %vm5133_vm9  ;;  %vm1004_vm4 = vcmp.ge.s32.totalorder %v3493_v15, 0  ;;  %vm1012_vm9 = vcmp.lt.s32.totalorder %v3493_v15, 8 }
  0x48   : > { %1057 = vperm.xlu1 %3314, %v1042_v26   ;;  %vm932_vm0 = vmand %vm5189_vm5, %vm5134_vm12  ;;  %v955_v57 = vsel %vm3865_vm8, 1, %v3342_v2  ;;  %vm1003_vm8 = vcmp.ge.s32.totalorder %v3442_v1, 0 }
  0x49   : > { %vm948_vm1 = vmand %vm932_vm0, %vm5135_vm2  ;;  %vm5138_vm0 = vcmp.ge.s32.totalorder %v3460_v6, 0  ;;  %vm5192_vm2 = vcmp.ge.s32.totalorder %v3625_v41, 0 }
  0x4a   : > { %vm823_vm13 = vmand %vm3628_vm6, %vm5137_vm14  ;;  %v956_v56 = vsel %vm948_vm1, 1, %v3342_v2  ;;  %vm5142_vm1 = vcmp.lt.s32.totalorder %v3460_v6, 8  ;;  %vm5198_vm14 = vcmp.ge.s32.totalorder %v3643_v45, 0 }
  0x4b   : > { %1054 = vperm.xlu0 %3313, %v1041_v55   ;;  %vm839_vm5 = vmand %vm823_vm13, %vm5136_vm15  ;;  %vm1011_vm13 = vcmp.lt.s32.totalorder %v3442_v1, 8  ;;  %vm5139_vm15 = vcmp.ge.s32.totalorder %v3901_v43, 0 }
  0x4c   : > { %vm3887_vm12 = vmand %vm1004_vm4, %vm1012_vm9  ;;  %vm5193_vm9 = vcmp.lt.s32.totalorder %v3625_v41, 8  ;;  %v847_v62 = vsel %vm839_vm5, 1, %v3342_v2  ;;  %vm5199_vm5 = vcmp.lt.s32.totalorder %v3643_v45, 8 }
  0x4d   : > { %v5191_v33 = vsel %vm3887_vm12, 4294967295, %v5190_v33  ;;  %616 = vmatmul.bf16.gmra.mxu0 %v532_v13  ;;  %vm1028_vm6 = vmand %vm3887_vm12, %vm5192_vm2 }
  0x4e   : > { %975 = vperm.xlu2 %3315, %v956_v56   ;;  %vm3905_vm4 = vmand %vm1028_vm6, %vm5193_vm9  ;;  %v1154_v56 = vadd.s32 1, %v3510_v18 }
  0x4f   : > { %vm824_vm2 = vmand %vm3513_vm11, %vm5138_vm0  ;;  %vm5140_vm0 = vcmp.lt.s32.totalorder %v3901_v43, 8  ;;  %v1044_v16 = vsel %vm3905_vm4, 1, %v3342_v2 }
  0x50   : > { %972 = vperm.xlu1 %3314, %v955_v57   ;;  %vm840_vm6 = vmand %vm824_vm2, %vm5142_vm1 }
  0x51   : > { %vm3921_vm9 = vmand %vm1003_vm8, %vm1011_vm13  ;;  %v848_v20 = vsel %vm840_vm6, 1, %v3342_v2  ;;  %vm5141_vm13 = vcmp.ge.s32.totalorder %v3916_v60, 0 }
  0x52   : > { %v5197_v63 = vsel %vm3921_vm9, 4294967295, %v5196_v63  ;;  %vm1027_vm11 = vmand %vm3921_vm9, %vm5198_vm14  ;;  %vm5143_vm14 = vcmp.lt.s32.totalorder %v3916_v60, 8  ;;  %vm1167_vm9 = vcmp.lt.s32.totalorder %v1151_v35, 8 }
  0x53   : > { %858 = vperm.xlu0 %3313, %v847_v62   ;;  %vm3934_vm8 = vmand %vm1027_vm11, %vm5199_vm5  ;;  %vm5145_vm11 = vcmp.ge.s32.totalorder %v3520_v21, 0  ;;  %vm5204_vm5 = vnez %v5169_v59 }
  0x54   : > { %vm933_vm2 = vmand %vm3655_vm3, %vm5139_vm15  ;;  %vm5144_vm15 = vcmp.lt.s32.totalorder %v3520_v21, 8  ;;  %v1043_v23 = vsel %vm3934_vm8, 1, %v3342_v2  ;;  %vm5210_vm8 = vcmp.ge.s32.totalorder %v3670_v51, 0 }
  0x55   : > { %vm3949_vm6 = vmand %vm933_vm2, %vm5140_vm0  ;;  %vm1006_vm2 = vcmp.ge.s32.totalorder %v3635_v44, 0  ;;  %vm1014_vm0 = vcmp.lt.s32.totalorder %v3635_v44, 8 }
  0x56   : > { %861 = vperm.xlu2 %3315, %v848_v20   ;;  %vm934_vm3 = vmand %vm5204_vm5, %vm5141_vm13  ;;  %vm5205_vm5 = vnez %v5162_v38  ;;  %v957_v40 = vsel %vm3949_vm6, 1, %v3342_v2  ;;  %vm5218_vm6 = vcmp.ge.s32.totalorder %v3692_v54, 0 }
  0x57   : > { %vm950_vm4 = vmand %vm934_vm3, %vm5143_vm14 }
  0x58   : > { %1063 = vperm.xlu1 %3314, %v1044_v16   ;;  %vm825_vm13 = vmand %vm5205_vm5, %vm5145_vm11  ;;  %v958_v30 = vsel %vm950_vm4, 1, %v3342_v2  ;;  %vm5213_vm4 = vcmp.ge.s32.totalorder %v3740_v0, 0  ;;  %v1156_v16 = vadd.s32 1, %v3493_v15 }
  0x59   : > { %vm3974_vm1 = vmand %vm825_vm13, %vm5144_vm15  ;;  %vm1005_vm13 = vcmp.ge.s32.totalorder %v3569_v31, 0 }
  0x5a   : > { %vm3978_vm3 = vmand %vm1006_vm2, %vm1014_vm0  ;;  %vm1013_vm0 = vcmp.lt.s32.totalorder %v3569_v31, 8  ;;  %vm5214_vm2 = vnez %v5171_v8  ;;  %v849_v26 = vsel %vm3974_vm1, 1, %v3342_v2  ;;  %vm5222_vm1 = vcmp.lt.s32.totalorder %v3692_v54, 8 }
  0x5b   : > { %v5209_v27 = vsel %vm3978_vm3, 4294967295, %v5208_v27  ;;  %1060 = vperm.xlu0 %3313, %v1043_v23   ;;  %vm3988_vm5 = vmand %vm3978_vm3, %vm5210_vm8  ;;  %vm5215_vm8 = vcmp.lt.s32.totalorder %v3740_v0, 8  ;;  %vm1159_vm3 = vcmp.ge.s32.totalorder %v1151_v35, 0 }
  0x5c   : > { %vm1087_vm14 = vmand %vm5214_vm2, %vm5213_vm4  ;;  %vm1160_vm2 = vcmp.ge.s32.totalorder %v1152_v10, 0 }
  0x5d   : > { %621 = vmatmul.bf16.gmra.mxu0 %v533_v25  ;;  %vm1095_vm15 = vmand %vm1087_vm14, %vm5215_vm8  ;;  %vm5219_vm14 = vcmp.lt.s32.totalorder %v3670_v51, 8  ;;  %vm1168_vm8 = vcmp.lt.s32.totalorder %v1152_v10, 8  ;;  %v1158_v10 = vadd.s32 1, %v3635_v44  ;;  %v3214_v44 = vld [vmem:[%s5081_s6 + $0x70] sm:$0xff] }
  0x5e   : > { %981 = vperm.xlu2 %3315, %v958_v30   ;;  %vm4004_vm11 = vmand %vm1005_vm13, %vm1013_vm0  ;;  %v1103_v8 = vsel %vm1095_vm15, 1, %v3342_v2 }
  0x5f   : > { %v5217_v47 = vsel %vm4004_vm11, 4294967295, %v5216_v47  ;;  %vm1029_vm4 = vmand %vm4004_vm11, %vm5218_vm6 }
  0x60   : > { %978 = vperm.xlu1 %3314, %v957_v40   ;;  %vm1038_vm13 = vmand %vm3988_vm5, %vm5219_vm14  ;;  %v3205_v40 = vld [vmem:[%s5081_s6 + $0x28] sm:$0xff] }
  0x61   : > { %vm4019_vm0 = vmand %vm1159_vm3, %vm1167_vm9  ;;  %v1046_v50 = vsel %vm1038_vm13, 1, %v3342_v2  ;;  %vm5226_vm9 = vcmp.ge.s32.totalorder %v3583_v34, 0  ;;  %vm5227_vm3 = vcmp.lt.s32.totalorder %v3583_v34, 8  ;;  %vm5229_vm13 = vcmp.ge.s32.totalorder %v3714_v61, 0 }
  0x62   : > { %vm1037_vm12 = vmand %vm1029_vm4, %vm5222_vm1 }
  0x63   : > { %864 = vperm.xlu0 %3313, %v849_v26   ;;  %vm1183_vm6 = vmand %vm4019_vm0, %vm5223_vm10  ;;  %v1045_v53 = vsel %vm1037_vm12, 1, %v3342_v2  ;;  %vm5228_vm10 = vcmp.lt.s32.totalorder %v3488_v14, 8  ;;  %vm5231_vm12 = vcmp.lt.s32.totalorder %v3714_v61, 8 }
  0x64   : > { %vm4031_vm5 = vmand %vm1160_vm2, %vm1168_vm8  ;;  %vm5230_vm8 = vcmp.ge.s32.totalorder %v3740_v0, 0 }
  0x65   : > { %vm1184_vm15 = vmand %vm4031_vm5, %vm5226_vm9 }
  0x66   : > { %1112 = vperm.xlu2 %3315, %v1103_v8   ;;  %vm1192_vm4 = vmand %vm1184_vm15, %vm5227_vm3  ;;  %vm5233_vm15 = vcmp.lt.s32.totalorder %v3740_v0, 8  ;;  %v1153_v0 = vadd.s32 1, %v3455_v5 }
  0x67   : > { %vm1191_vm14 = vmand %vm1183_vm6, %vm5228_vm10  ;;  %v1200_v55 = vsel %vm1192_vm4, 1, %v3342_v2  ;;  %vm5232_vm6 = vcmp.ge.s32.totalorder %v3555_v29, 0  ;;  %vm5234_vm4 = vcmp.ge.s32.totalorder %v3479_v11, 0 }
  0x68   : > { %1069 = vperm.xlu1 %3314, %v1046_v50   ;;  %vm1088_vm2 = vmand %vm3801_vm7, %vm5229_vm13  ;;  %v1199_v13 = vsel %vm1191_vm14, 1, %v3342_v2  ;;  %vm5235_vm14 = vcmp.lt.s32.totalorder %v3555_v29, 8  ;;  %v3213_v50 = vld [vmem:[%s5081_s6 + $0x68] sm:$0xff] }
  0x69   : > { %vm1311_vm1 = vmand %vm4019_vm0, %vm5230_vm8 }
  0x6a   : > { %vm1096_vm9 = vmand %vm1088_vm2, %vm5231_vm12  ;;  %vm5236_vm2 = vcmp.lt.s32.totalorder %v3479_v11, 8  ;;  %vm5238_vm12 = vnez %v5183_v49 }
  0x6b   : > { %1066 = vperm.xlu0 %3313, %v1045_v53   ;;  %vm1248_vm7 = vmand %vm4031_vm5, %vm5232_vm6  ;;  %v1104_v34 = vsel %vm1096_vm9, 1, %v3342_v2  ;;  %vm5240_vm6 = vnez %v5179_v36  ;;  %v4323_v36 = vld [vmem:[%s5079_s4] ss:$0 sm:$0xff] }
  0x6c   : > { %vm1319_vm3 = vmand %vm1311_vm1, %vm5233_vm15  ;;  %vm5237_vm1 = vcmp.ge.s32.totalorder %v3752_v7, 0  ;;  %vm5241_vm15 = vcmp.lt.s32.totalorder %v3752_v7, 8 }
  0x6d   : > { %vm1247_vm10 = vmand %vm4019_vm0, %vm5234_vm4  ;;  %v1327_v32 = vsel %vm1319_vm3, 1, %v3342_v2  ;;  %vm5239_vm0 = vcmp.ge.s32.totalorder %v3762_v12, 0  ;;  %vm1161_vm4 = vcmp.ge.s32.totalorder %v1153_v0, 0 }
  0x6e   : > { %1211 = vperm.xlu2 %3315, %v1200_v55   ;;  %v4056_v14 = vpop.permute.xlu2 %867  ;;  %vm1256_vm13 = vmand %vm1248_vm7, %vm5235_vm14  ;;  %vm5242_vm14 = vcmp.lt.s32.totalorder %v3762_v12, 8 }
  0x6f   : > { %vm1255_vm8 = vmand %vm1247_vm10, %vm5236_vm2  ;;  %v1264_v57 = vsel %vm1256_vm13, 1, %v3342_v2  ;;  %vm1169_vm10 = vcmp.lt.s32.totalorder %v1153_v0, 8  ;;  %vm1162_vm13 = vcmp.ge.s32.totalorder %v1154_v56, 0  ;;  %v3212_v0 = vld [vmem:[%s5081_s6 + $0x60] sm:$0xff] }
  0x70   : > { %1208 = vperm.xlu1 %3314, %v1199_v13   ;;  %vm1089_vm9 = vmand %vm5238_vm12, %vm5237_vm1  ;;  %v1263_v5 = vsel %vm1255_vm8, 1, %v3342_v2  ;;  %vm1170_vm1 = vcmp.lt.s32.totalorder %v1154_v56, 8  ;;  %vm5243_vm12 = vcmp.ge.s32.totalorder %v3714_v61, 0  ;;  %vm5248_vm8 = vcmp.lt.s32.totalorder %v3714_v61, 8 }
  0x71   : > { %vm1090_vm7 = vmand %vm5240_vm6, %vm5239_vm0  ;;  %v1155_v61 = vadd.s32 1, %v3442_v1 }
  0x72   : > { %vm1097_vm3 = vmand %vm1089_vm9, %vm5241_vm15  ;;  %vm5249_vm15 = vcmp.ge.s32.totalorder %v3460_v6, 0 }
  0x73   : > { %1115 = vperm.xlu0 %3313, %v1104_v34   ;;  %vm1098_vm2 = vmand %vm1090_vm7, %vm5242_vm14  ;;  %v1105_v49 = vsel %vm1097_vm3, 1, %v3342_v2  ;;  %vm5251_vm14 = vcmp.lt.s32.totalorder %v3460_v6, 8  ;;  %vm5252_vm3 = vcmp.lt.s32.totalorder %v3550_v28, 8 }
  0x74   : > { %vm1312_vm0 = vmand %vm4031_vm5, %vm5243_vm12  ;;  %v1106_v18 = vsel %vm1098_vm2, 1, %v3342_v2 }
  0x75   : > { %vm4096_vm6 = vmand %vm1161_vm4, %vm1169_vm10  ;;  %vm5250_vm4 = vcmp.ge.s32.totalorder %v3550_v28, 0 }
  0x76   : > { %1336 = vperm.xlu2 %3315, %v1327_v32   ;;  %vm4101_vm9 = vmand %vm1162_vm13, %vm1170_vm1  ;;  %vm5253_vm1 = vcmp.ge.s32.totalorder %v3469_v9, 0 }
  0x77   : > { %v4085_v29 = vpop.permute.xlu2 %870  ;;  %vm1320_vm7 = vmand %vm1312_vm0, %vm5248_vm8  ;;  %vm5254_vm0 = vcmp.ge.s32.totalorder %v3762_v12, 0 }
  0x78   : > { %1275 = vperm.xlu1 %3314, %v1264_v57   ;;  %vm1249_vm5 = vmand %vm4096_vm6, %vm5249_vm15  ;;  %v1328_v58 = vsel %vm1320_vm7, 1, %v3342_v2  ;;  %vm5255_vm7 = vcmp.lt.s32.totalorder %v3469_v9, 8  ;;  %v3211_v57 = vld [vmem:[%s5081_s6 + $0x58] sm:$0xff] }
  0x79   : > { %vm1186_vm10 = vmand %vm4101_vm9, %vm5250_vm4  ;;  %vm1171_vm4 = vcmp.lt.s32.totalorder %v1155_v61, 8 }
  0x7a   : > { %vm1257_vm2 = vmand %vm1249_vm5, %vm5251_vm14  ;;  %vm1163_vm5 = vcmp.ge.s32.totalorder %v1155_v61, 0  ;;  %v4346_v61 = vld [vmem:[%s5080_s5] ss:$0 sm:$0xff] }
  0x7b   : > { %1272 = vperm.xlu0 %3313, %v1263_v5   ;;  %vm1194_vm13 = vmand %vm1186_vm10, %vm5252_vm3  ;;  %v1265_v20 = vsel %vm1257_vm2, 1, %v3342_v2  ;;  %vm5256_vm10 = vcmp.ge.s32.totalorder %v3752_v7, 0  ;;  %vm5257_vm2 = vcmp.lt.s32.totalorder %v3762_v12, 8 }
  0x7c   : > { %vm1185_vm12 = vmand %vm4096_vm6, %vm5253_vm1  ;;  %v1202_v6 = vsel %vm1194_vm13, 1, %v3342_v2  ;;  %vm5260_vm13 = vcmp.ge.s32.totalorder %v3520_v21, 0 }
  0x7d   : > { %vm1314_vm8 = vmand %vm4101_vm9, %vm5254_vm0 }
  0x7e   : > { %1121 = vperm.xlu2 %3315, %v1106_v18   ;;  %vm1193_vm15 = vmand %vm1185_vm12, %vm5255_vm7 }
  0x7f   : > { %vm1313_vm14 = vmand %vm4096_vm6, %vm5256_vm10  ;;  %v1201_v1 = vsel %vm1193_vm15, 1, %v3342_v2  ;;  %vm5261_vm6 = vcmp.lt.s32.totalorder %v3752_v7, 8  ;;  %vm5263_vm15 = vcmp.lt.s32.totalorder %v3520_v21, 8  ;;  %v3208_v21 = vld [vmem:[%s5081_s6 + $0x40] sm:$0xff] }
  0x80   : > { %1118 = vperm.xlu1 %3314, %v1105_v49   ;;  %v4117_v62 = vpop.permute.xlu2 %873  ;;  %vm1322_vm3 = vmand %vm1314_vm8, %vm5257_vm2  ;;  %vm5262_vm8 = vcmp.ge.s32.totalorder %v3643_v45, 0  ;;  %vm1172_vm2 = vcmp.lt.s32.totalorder %v1156_v16, 8 }
  0x81   : > { %vm4143_vm1 = vmand %vm1163_vm5, %vm1171_vm4  ;;  %v1330_v12 = vsel %vm1322_vm3, 1, %v3342_v2  ;;  %vm5265_vm4 = vnez %v5191_v33  ;;  %vm5266_vm3 = vcmp.lt.s32.totalorder %v3643_v45, 8 }
  0x82   : > { %vm1250_vm12 = vmand %vm4101_vm9, %vm5260_vm13  ;;  %vm5264_vm9 = vcmp.ge.s32.totalorder %v3837_v42, 0 }
  0x83   : > { %1339 = vperm.xlu0 %3313, %v1328_v58   ;;  %vm1321_vm0 = vmand %vm1313_vm14, %vm5261_vm6  ;;  %vm1164_vm14 = vcmp.ge.s32.totalorder %v1156_v16, 0  ;;  %vm5267_vm6 = vcmp.ge.s32.totalorder %v3825_v37, 0 }
  0x84   : > { %vm1187_vm7 = vmand %vm4143_vm1, %vm5262_vm8  ;;  %v1329_v48 = vsel %vm1321_vm0, 1, %v3342_v2  ;;  %vm5268_vm8 = vnez %v5197_v63 }
  0x85   : > { %vm1258_vm5 = vmand %vm1250_vm12, %vm5263_vm15  ;;  %vm5271_vm15 = vcmp.lt.s32.totalorder %v3837_v42, 8 }
  0x86   : > { %1278 = vperm.xlu2 %3315, %v1265_v20   ;;  %vm1092_vm10 = vmand %vm5265_vm4, %vm5264_vm9  ;;  %v1266_v15 = vsel %vm1258_vm5, 1, %v3342_v2  ;;  %vm5272_vm4 = vcmp.lt.s32.totalorder %v3825_v37, 8  ;;  %vm5275_vm5 = vcmp.ge.s32.totalorder %v3530_v22, 0  ;;  %v3209_v20 = vld [vmem:[%s5081_s6 + $0x48] sm:$0xff] }
  0x87   : > { %vm1195_vm13 = vmand %vm1187_vm7, %vm5266_vm3 }
  0x88   : > { %1217 = vperm.xlu1 %3314, %v1202_v6   ;;  %v4147_v9 = vpop.permute.xlu2 %796  ;;  %vm1091_vm11 = vmand %vm5268_vm8, %vm5267_vm6  ;;  %v1203_v63 = vsel %vm1195_vm13, 1, %v3342_v2  ;;  %vm5279_vm13 = vcmp.lt.s32.totalorder %v3530_v22, 8  ;;  %v3215_v22 = vld [vmem:[%s5081_s6 + $0x78] sm:$0xff] }
  0x89   : > { %v782_v4 = vpop.permute.xlu1 %781  ;;  %vm4175_vm12 = vmand %vm1164_vm14, %vm1172_vm2  ;;  %3296 = vmatpush.bf16.msra.mxu3 %v3215_v22  ;;  %2016 = vmatpush.bf16.msra.mxu2 %v3215_v22 }
  0x8a   : > { %vm800_vm0 = vcmp.eq.s32.totalorder %v782_v4, 1  ;;  %vm1100_vm9 = vmand %vm1092_vm10, %vm5271_vm15 }
  0x8b   : > { %1214 = vperm.xlu0 %3313, %v1201_v1   ;;  %vm4183_vm7 = vmand %vm1091_vm11, %vm5272_vm4  ;;  %v1108_v59 = vsel %vm1100_vm9, 1, %v3342_v2  ;;  %vm5278_vm11 = vcmp.ge.s32.totalorder %v3449_v3, 0 }
  0x8c   : > { %v776_v17 = vpop.permute.xlu0 %775  ;;  %vm1252_vm14 = vmand %vm4175_vm12, %vm5275_vm5  ;;  %v1107_v30 = vsel %vm4183_vm7, 1, %v3342_v2  ;;  %vm5285_vm7 = vcmp.lt.s32.totalorder %v3625_v41, 8 }
  0x8d   : > { %vm798_vm2 = vcmp.eq.s32.totalorder %v776_v17, 1  ;;  %vm1251_vm6 = vmand %vm4143_vm1, %vm5278_vm11  ;;  %3297 = vmatpush.bf16.msra.mxu3 %v3214_v44  ;;  %2017 = vmatpush.bf16.msra.mxu2 %v3214_v44  ;;  %v3228_v44 = vld [vmem:[%s5081_s6 + $0xe0] sm:$0xff] }
  0x8e   : > { %1345 = vperm.xlu2 %3315, %v1330_v12   ;;  %vm1260_vm15 = vmand %vm1252_vm14, %vm5279_vm13  ;;  %vm5284_vm14 = vcmp.lt.s32.totalorder %v3449_v3, 8  ;;  %v1157_v3 = vadd.s32 1, %v3569_v31  ;;  %v3231_v12 = vld [vmem:[%s5081_s6 + $0xf8] sm:$0xff] }
  0x8f   : > { %v1268_v38 = vsel %vm1260_vm15, 1, %v3342_v2  ;;  %vm5292_vm15 = vnez %v5217_v47  ;;  %2074 = vmatpush.bf16.msrb.mxu0 %v3231_v12  ;;  %v3218_v12 = vld [vmem:[%s5081_s6 + $0x90] sm:$0xff] }
  0x90   : > { %1342 = vperm.xlu1 %3314, %v1329_v48   ;;  %v4187_v33 = vpop.permute.xlu2 %1048 }
  0x91   : > { %3298 = vmatpush.bf16.msra.mxu3 %v3213_v50  ;;  %2018 = vmatpush.bf16.msra.mxu2 %v3213_v50 }
  0x92   : > { %v785_v7 = vpop.permute.xlu1 %784 }
  0x93   : > { %1281 = vperm.xlu0 %3313, %v1266_v15   ;;  %vm801_vm3 = vcmp.eq.s32.totalorder %v785_v7, 1 }
  0x94   : > { %vm4194_vm10 = vmpackc.low %vm801_vm3, %vm800_vm0  ;;  %vm5282_vm0 = vcmp.ge.s32.totalorder %v3625_v41, 0  ;;  %vm5283_vm3 = vcmp.ge.s32.totalorder %v3837_v42, 0 }
  0x95   : > { %v5277_v19 = vsel %vm4194_vm10, 4294967295, %v5276_v19  ;;  %v779_v23 = vpop.permute.xlu0 %778  ;;  %vm1188_vm9 = vmand %vm4175_vm12, %vm5282_vm0  ;;  %vm1173_vm10 = vcmp.lt.s32.totalorder %v1157_v3, 8  ;;  %3299 = vmatpush.bf16.msra.mxu3 %v3212_v0  ;;  %2019 = vmatpush.bf16.msra.mxu2 %v3212_v0 }
  0x96   : > { %vm799_vm8 = vcmp.eq.s32.totalorder %v779_v23, 1  ;;  %1220 = vperm.xlu2 %3315, %v1203_v63   ;;  %vm1316_vm5 = vmand %vm4175_vm12, %vm5283_vm3  ;;  %vm5293_vm3 = vcmp.ge.s32.totalorder %v3825_v37, 0  ;;  %v3206_v63 = vld [vmem:[%s5081_s6 + $0x30] sm:$0xff] }
  0x97   : > { %vm4205_vm4 = vmpackc.low %vm799_vm8, %vm798_vm2  ;;  %vm5288_vm8 = vcmp.lt.s32.totalorder %v3837_v42, 8 }
  0x98   : > { %1127 = vperm.xlu1 %3314, %v1108_v59   ;;  %vm1259_vm2 = vmand %vm1251_vm6, %vm5284_vm14  ;;  %v4240_v24 = vpop.permute.xlu2 %969  ;;  %vm5291_vm6 = vcmp.ge.s32.totalorder %v3901_v43, 0  ;;  %v3223_v59 = vld [vmem:[%s5081_s6 + $0xb8] sm:$0xff] }
  0x99   : > { %vm4228_vm11 = vmand %vm1188_vm9, %vm5285_vm7  ;;  %v1267_v8 = vsel %vm1259_vm2, 1, %v3342_v2  ;;  %vm1166_vm2 = vcmp.ge.s32.totalorder %v1158_v10, 0  ;;  %vm1174_vm7 = vcmp.lt.s32.totalorder %v1158_v10, 8  ;;  %3300 = vmatpush.bf16.msra.mxu3 %v3211_v57  ;;  %2020 = vmatpush.bf16.msra.mxu2 %v3211_v57  ;;  %v3229_v10 = vld [vmem:[%s5081_s6 + $0xe8] sm:$0xff]  ;;  %v3220_v57 = vld [vmem:[%s5081_s6 + $0xa0] sm:$0xff] }
  0x9a   : > { %v791_v35 = vpop.permute.xlu1 %790  ;;  %vm4235_vm13 = vmand %vm1316_vm5, %vm5288_vm8  ;;  %v1204_v42 = vsel %vm4228_vm11, 1, %v3342_v2  ;;  %vm5296_vm8 = vcmp.lt.s32.totalorder %v3901_v43, 8 }
  0x9b   : > { %1124 = vperm.xlu0 %3313, %v1107_v30   ;;  %vm803_vm12 = vcmp.eq.s32.totalorder %v791_v35, 1  ;;  %vm1093_vm0 = vmand %vm5292_vm15, %vm5291_vm6  ;;  %vm1165_vm15 = vcmp.ge.s32.totalorder %v1157_v3, 0  ;;  %v1332_v32 = vsel %vm4235_vm13, 1, %v3342_v2  ;;  %vm5308_vm13 = vcmp.lt.s32.totalorder %v3670_v51, 8  ;;  %v3222_v3 = vld [vmem:[%s5081_s6 + $0xb0] sm:$0xff] }
  0x9c   : > { %vm1315_vm5 = vmand %vm4143_vm1, %vm5293_vm3  ;;  %vm805_vm1 = vcmp.eq.s32.totalorder %v4147_v9, 1 }
  0x9d   : > { %v788_v41 = vpop.permute.xlu0 %787  ;;  %vm1101_vm6 = vmand %vm1093_vm0, %vm5296_vm8 }
  0x9e   : > { %vm802_vm9 = vcmp.eq.s32.totalorder %v788_v41, 1  ;;  %1287 = vperm.xlu2 %3315, %v1268_v38   ;;  %vm4273_vm11 = vmand %vm1166_vm2, %vm1174_vm7  ;;  %v1109_v55 = vsel %vm1101_vm6, 1, %v3342_v2  ;;  %vm5306_vm2 = vcmp.ge.s32.totalorder %v3670_v51, 0  ;;  %vm5307_vm7 = vcmp.ge.s32.totalorder %v3692_v54, 0 }
  0x9f   : > { %vm4254_vm14 = vmpackc.low %vm803_vm12, %vm802_vm9  ;;  %vm5297_vm12 = vcmp.lt.s32.totalorder %v3825_v37, 8 }
  0xa0   : > { %1284 = vperm.xlu1 %3314, %v1267_v8   ;;  %vm4266_vm9 = vmand %vm1315_vm5, %vm5297_vm12  ;;  %v4298_v56 = vpop.permute.xlu2 %855  ;;  %v3204_v8 = vld [vmem:[%s5081_s6 + $0x20] sm:$0xff] }
  0xa1   : > { %vm4278_vm3 = vmand %vm1165_vm15, %vm1173_vm10  ;;  %v1331_v5 = vsel %vm4266_vm9, 1, %v3342_v2  ;;  %vm5309_vm15 = vcmp.ge.s32.totalorder %v3916_v60, 0  ;;  %vm5312_vm9 = vcmp.lt.s32.totalorder %v3916_v60, 8 }
  0xa2   : > { %v794_v52 = vpop.permute.xlu1 %793  ;;  %vm1190_vm10 = vmand %vm4273_vm11, %vm5306_vm2 }
  0xa3   : > { %1223 = vperm.xlu0 %3313, %v1204_v42   ;;  %vm804_vm0 = vcmp.eq.s32.totalorder %v794_v52, 1  ;;  %vm1189_vm8 = vmand %vm4278_vm3, %vm5307_vm7  ;;  %vm5313_vm7 = vcmp.ge.s32.totalorder %v3901_v43, 0  ;;  %v3221_v42 = vld [vmem:[%s5081_s6 + $0xa8] sm:$0xff] }
  0xa4   : > { %vm4282_vm5 = vmpackc.low %vm805_vm1, %vm804_vm0  ;;  %vm5310_vm1 = vnez %v5209_v27  ;;  %vm5311_vm0 = vcmp.lt.s32.totalorder %v3692_v54, 8  ;;  %v3210_v54 = vld [vmem:[%s5081_s6 + $0x50] sm:$0xff] }
  0xa5   : > { %v4286_v34 = vpop.permute.xlu0 %876  ;;  %vm1198_vm6 = vmand %vm1190_vm10, %vm5308_vm13  ;;  %vm5314_vm13 = vcmp.ge.s32.totalorder %v3648_v46, 0  ;;  %3301 = vmatpush.bf16.msra.mxu3 %v3210_v54  ;;  %2021 = vmatpush.bf16.msra.mxu2 %v3210_v54  ;;  %v3219_v54 = vld [vmem:[%s5081_s6 + $0x98] sm:$0xff] }
  0xa6   : > { %1130 = vperm.xlu2 %3315, %v1109_v55   ;;  %vm1094_vm12 = vmand %vm5310_vm1, %vm5309_vm15  ;;  %v1206_v51 = vsel %vm1198_vm6, 1, %v3342_v2  ;;  %vm5315_vm15 = vcmp.lt.s32.totalorder %v3901_v43, 8  ;;  %v3203_v55 = vld [vmem:[%s5081_s6 + $0x18] sm:$0xff] }
  0xa7   : > { %vm1197_vm2 = vmand %vm1189_vm8, %vm5311_vm0 }
  0xa8   : > { %1351 = vperm.xlu1 %3314, %v1332_v32   ;;  %vm1102_vm10 = vmand %vm1094_vm12, %vm5312_vm9  ;;  %v1205_v49 = vsel %vm1197_vm2, 1, %v3342_v2  ;;  %v4354_v1 = vpop.permute.xlu2 %975  ;;  %vm5316_vm12 = vcmp.lt.s32.totalorder %v3648_v46, 8  ;;  %vm5317_vm2 = vcmp.ge.s32.totalorder %v3616_v39, 0  ;;  %v3207_v46 = vld [vmem:[%s5081_s6 + $0x38] sm:$0xff] }
  0xa9   : > { %vm1317_vm8 = vmand %vm4278_vm3, %vm5313_vm7  ;;  %v1110_v6 = vsel %vm1102_vm10, 1, %v3342_v2  ;;  %3302 = vmatpush.bf16.msra.mxu3 %v3209_v20  ;;  %2022 = vmatpush.bf16.msra.mxu2 %v3209_v20  ;;  %vm5319_vm7 = vcmp.ge.s32.totalorder %v3916_v60, 0 }
  0xaa   : > { %v4316_v11 = vpop.permute.xlu1 %963  ;;  %v607_v18 = vpop.f32.mrf.mxu0  ;;  %vm1254_vm6 = vmand %vm4273_vm11, %vm5314_vm13  ;;  %1987 = vmatpush.bf16.msra.mxu1 %v3207_v46  ;;  %vm5320_vm13 = vcmp.lt.s32.totalorder %v3916_v60, 8 }
  0xab   : > { %1348 = vperm.xlu0 %3313, %v1331_v5   ;;  %v631_v58 = vmul.f32 %v4323_v36, %v607_v18  ;;  %vm1325_vm1 = vmand %vm1317_vm8, %vm5315_vm15  ;;  %vm883_vm15 = vcmp.eq.s32.totalorder %v4085_v29, 1  ;;  %v3224_v29 = vld [vmem:[%s5081_s6 + $0xc0] sm:$0xff] }
  0xac   : > { %vm1262_vm0 = vmand %vm1254_vm6, %vm5316_vm12  ;;  %v1333_v16 = vsel %vm1325_vm1, 1, %v3342_v2  ;;  %vm884_vm12 = vcmp.eq.s32.totalorder %v4117_v62, 1  ;;  %v3243_v62 = vld [vmem:[%s5081_s6 + $0x158] sm:$0xff] }
  0xad   : > { %v4328_v27 = vpop.permute.xlu0 %960  ;;  %vm1253_vm9 = vmand %vm4278_vm3, %vm5317_vm2  ;;  %v643_v4 = vadd.f32 %v4346_v61, %v631_v58  ;;  %v1270_v15 = vsel %vm1262_vm0, 1, %v3342_v2  ;;  %vm5318_vm3 = vcmp.lt.s32.totalorder %v3616_v39, 8  ;;  %3303 = vmatpush.bf16.msra.mxu3 %v3208_v21  ;;  %v3230_v39 = vld [vmem:[%s5081_s6 + $0xf0] sm:$0xff]  ;;  %2023 = vmatpush.bf16.msra.mxu2 %v3208_v21  ;;  %v3217_v21 = vld [vmem:[%s5081_s6 + $0x88] sm:$0xff]  ;;  %vm885_vm0 = vcmp.eq.s32.totalorder %v4286_v34, 1 }
  0xae   : > { %1229 = vperm.xlu2 %3315, %v1206_v51   ;;  %vm1261_vm10 = vmand %vm1253_vm9, %vm5318_vm3  ;;  %1988 = vmatpush.bf16.msra.mxu1 %v3206_v63  ;;  %v3202_v51 = vld [vmem:[%s5081_s6 + $0x10] sm:$0xff]  ;;  %v3247_v63 = vld [vmem:[%s5081_s6 + $0x178] sm:$0xff]  ;;  %v683_v34 = vlaneseq  ;;  %vm878_vm9 = vcmp.eq.s32.totalorder %v4298_v56, 1 }
  0xaf   : > { %v4382_v7 = vmax.f32 %v643_v4, 0.0  ;;  %v1269_v23 = vsel %vm1261_vm10, 1, %v3342_v2  ;;  %vm1318_vm8 = vmand %vm4273_vm11, %vm5319_vm7  ;;  %2075 = vmatpush.bf16.msrb.mxu0 %v3230_v39  ;;  %v3201_v4 = vld [vmem:[%s5081_s6 + $0x8] sm:$0xff]  ;;  %vm882_vm11 = vcmp.eq.s32.totalorder %v4056_v14, 1  ;;  %v3200_v14 = vld [vmem:[%s5081_s6] sm:$0xff]  ;;  %vm1071_vm7 = vcmp.eq.s32.totalorder %v4187_v33, 1 }
  0xb0   : > { %1226 = vperm.xlu1 %3314, %v1205_v49   ;;  %v4404_v38 = vpop.permute.xlu2 %861  ;;  %vm1326_vm6 = vmand %vm1318_vm8, %vm5320_vm13  ;;  %v3226_v49 = vld [vmem:[%s5081_s6 + $0xd0] sm:$0xff] }
  0xb1   : > { %2045 = vmatpush.bf16.msrb.mxu3 %v3223_v59  ;;  %v1334_v60 = vsel %vm1326_vm6, 1, %v3342_v2  ;;  %v3227_v2 = vld [vmem:[%s5081_s6 + $0xd8] sm:$0xff]  ;;  %vm3014_vm1 = vmpackc.low %vm883_vm15, %vm882_vm11  ;;  %2132 = vmatpush.bf16.msrb.mxu2 %v3247_v63  ;;  %v3237_v63 = vld [vmem:[%s5081_s6 + $0x128] sm:$0xff]  ;;  %vm984_vm15 = vcmp.eq.s32.totalorder %v4316_v11, 1 }
  0xb2   : > { %v4358_v28 = vpop.permute.xlu1 %966  ;;  %v609_v9 = vpop.f32.mrf.mxu0  ;;  %1989 = vmatpush.bf16.msra.mxu1 %v3205_v40  ;;  %vm3017_vm2 = vmpackc.low %vm885_vm0, %vm884_vm12 }
  0xb3   : > { %1133 = vperm.xlu0 %3313, %v1110_v6   ;;  %v632_v43 = vmul.f32 %v4323_v36, %v609_v9  ;;  %2076 = vmatpush.bf16.msrb.mxu0 %v3229_v10 }
  0xb5   : > { %v4373_v17 = vpop.permute.xlu0 %1051  ;;  %v644_v48 = vadd.f32 %v4346_v61, %v632_v43  ;;  %2046 = vmatpush.bf16.msrb.mxu3 %v3222_v3  ;;  %v3225_v43 = vld [vmem:[%s5081_s6 + $0xc8] sm:$0xff]  ;;  %v3216_v3 = vld [vmem:[%s5081_s6 + $0x80] sm:$0xff] }
  0xb6   : > { %1354 = vperm.xlu2 %3315, %v1333_v16   ;;  %1990 = vmatpush.bf16.msra.mxu1 %v3204_v8  ;;  %vm1072_vm8 = vcmp.eq.s32.totalorder %v4373_v17, 1 }
  0xb7   : > { %v4384_v45 = vmax.f32 %v644_v48, 0.0  ;;  %2077 = vmatpush.bf16.msrb.mxu0 %v3228_v44  ;;  %v3239_v44 = vld [vmem:[%s5081_s6 + $0x138] sm:$0xff]  ;;  %vm3032_vm6 = vmpackc.low %vm1072_vm8, %vm1071_vm7 }
  0xb8   : > { %1293 = vperm.xlu1 %3314, %v1270_v15   ;;  %v4440_v13 = vpop.permute.xlu2 %981 }
  0xb9   : > { %v1379_v30 = vpack.c.bf16 %v4384_v45, %v4382_v7  ;;  %2047 = vmatpush.bf16.msrb.mxu3 %v3221_v42 }
  0xba   : > { %v4398_v22 = vpop.permute.xlu1 %1057  ;;  %v612_v35 = vpop.f32.mrf.mxu0  ;;  %1991 = vmatpush.bf16.msra.mxu1 %v3203_v55 }
  0xbb   : > { %1290 = vperm.xlu0 %3313, %v1269_v23   ;;  %v633_v41 = vmul.f32 %v4323_v36, %v612_v35  ;;  %2078 = vmatpush.bf16.msrb.mxu0 %v3227_v2  ;;  %vm1074_vm7 = vcmp.eq.s32.totalorder %v4398_v22, 1  ;;  %v3261_v22 = vld [vmem:[%s5081_s6 + $0x1e8] sm:$0xff] }
  0xbd   : > { %v4412_v26 = vpop.permute.xlu0 %1054  ;;  %v645_v52 = vadd.f32 %v4346_v61, %v633_v41  ;;  %2048 = vmatpush.bf16.msrb.mxu3 %v3220_v57  ;;  %v3246_v41 = vld [vmem:[%s5081_s6 + $0x170] sm:$0xff]  ;;  %v3244_v57 = vld [vmem:[%s5081_s6 + $0x160] sm:$0xff] }
  0xbe   : > { %1992 = vmatpush.bf16.msra.mxu1 %v3202_v51  ;;  %2133 = vmatpush.bf16.msrb.mxu2 %v3246_v41  ;;  %vm1073_vm8 = vcmp.eq.s32.totalorder %v4412_v26, 1 }
  0xbf   : > { %v4448_v5 = vmax.f32 %v645_v52, 0.0  ;;  %2079 = vmatpush.bf16.msrb.mxu0 %v3226_v49  ;;  %v3238_v49 = vld [vmem:[%s5081_s6 + $0x130] sm:$0xff] }
  0xc0   : > { %v4480_v48 = vpop.permute.xlu2 %1112 }
  0xc1   : > { %2049 = vmatpush.bf16.msrb.mxu3 %v3219_v54 }
  0xc2   : > { %v4430_v47 = vpop.permute.xlu1 %972  ;;  %v614_v50 = vpop.f32.mrf.mxu0  ;;  %1993 = vmatpush.bf16.msra.mxu1 %v3201_v4 }
  0xc3   : > { %1357 = vperm.xlu0 %3313, %v1334_v60   ;;  %v634_v53 = vmul.f32 %v4323_v36, %v614_v50  ;;  %2080 = vmatpush.bf16.msrb.mxu0 %v3225_v43  ;;  %v3245_v60 = vld [vmem:[%s5081_s6 + $0x168] sm:$0xff] }
  0xc4   : > { %2134 = vmatpush.bf16.msrb.mxu2 %v3245_v60 }
  0xc5   : > { %v4442_v32 = vpop.permute.xlu0 %858  ;;  %v646_v0 = vadd.f32 %v4346_v61, %v634_v53  ;;  %2050 = vmatpush.bf16.msrb.mxu3 %v3218_v12 }
  0xc6   : > { %1994 = vmatpush.bf16.msra.mxu1 %v3200_v14  ;;  %vm879_vm3 = vcmp.eq.s32.totalorder %v4442_v32, 1 }
  0xc7   : > { %v4450_v18 = vmax.f32 %v646_v0, 0.0  ;;  %2081 = vmatpush.bf16.msrb.mxu0 %v3224_v29  ;;  %v3242_v29 = vld [vmem:[%s5081_s6 + $0x150] sm:$0xff]  ;;  %vm3008_vm13 = vmpackc.low %vm879_vm3, %vm878_vm9 }
  0xc8   : > { %v4521_v42 = vpop.permute.xlu2 %1211  ;;  %2135 = vmatpush.bf16.msrb.mxu2 %v3244_v57 }
  0xc9   : > { %v1388_v58 = vpack.c.bf16 %v4450_v18, %v4448_v5  ;;  %2051 = vmatpush.bf16.msrb.mxu3 %v3217_v21  ;;  %v676_v21 = vrot.slane %v4384_v45, 7 }
  0xca   : > { %v4463_v20 = vpop.permute.xlu1 %1063  ;;  %v617_v6 = vpop.f32.mrf.mxu0  ;;  %2103 = vmatpush.bf16.msrb.mxu1 %v3239_v44 }
  0xcb   : > { %v635_v9 = vmul.f32 %v4323_v36, %v617_v6 }
  0xcc   : > { %2136 = vmatpush.bf16.msrb.mxu2 %v3243_v62  ;;  %v3240_v62 = vld [vmem:[%s5081_s6 + $0x140] sm:$0xff] }
  0xcd   : > { %v4474_v16 = vpop.permute.xlu0 %1060  ;;  %v647_v46 = vadd.f32 %v4346_v61, %v635_v9  ;;  %2052 = vmatpush.bf16.msrb.mxu3 %v3216_v3 }
  0xce   : > { %2104 = vmatpush.bf16.msrb.mxu1 %v3238_v49 }
  0xcf   : > { %v4482_v15 = vmax.f32 %v647_v46, 0.0  ;;  %v4552_v46 = vshrl.u32 %v683_v34, 7 }
  0xd0   : > { %v1337_v43 = vpop.permute.xlu2 %1336  ;;  %2137 = vmatpush.bf16.msrb.mxu2 %v3242_v29  ;;  %v677_v29 = vrot.slane %v4448_v5, 7 }
  0xd1   : > { %v4498_v39 = vpack.c.bf16 %v4482_v15, %v4450_v18  ;;  %vm685_vm10 = vcmp.lt.s32.totalorder %v4552_v46, 1  ;;  %vm902_vm11 = vcmp.lt.s32.totalorder %v4552_v46, 7  ;;  %vm1359_vm12 = vcmp.eq.s32.totalorder %v1337_v43, 1  ;;  %v3235_v43 = vld [vmem:[%s5081_s6 + $0x118] sm:$0xff] }
  0xd2   : > { %v4500_v23 = vpop.permute.xlu1 %978  ;;  %v619_v59 = vpop.f32.mrf.mxu0  ;;  %2105 = vmatpush.bf16.msrb.mxu1 %v3237_v63  ;;  %v678_v63 = vrot.slane %v4450_v18, 7 }
  0xd3   : > { %v636_v35 = vmul.f32 %v4323_v36, %v619_v59  ;;  %3016 = vmatmul.msk.bf16.vlgmr.msra.gmra.mxu3 %vm3014_vm1, %v4498_v39  ;;  %vm983_vm1 = vcmp.eq.s32.totalorder %v4328_v27, 1  ;;  %v3263_v27 = vld [vmem:[%s5081_s6 + $0x1f8] sm:$0xff] }
  0xd4   : > { %2190 = vmatpush.bf16.msra.mxu0 %v3263_v27  ;;  %v896_v27 = vrot.slane %v4448_v5, 1 }
  0xd5   : > { %v4504_v40 = vpop.permute.xlu0 %864  ;;  %v648_v10 = vadd.f32 %v4346_v61, %v636_v35  ;;  %v675_v35 = vrot.slane %v4382_v7, 7 }
  0xd6   : > { %vm881_vm9 = vcmp.eq.s32.totalorder %v4504_v40, 1  ;;  %v4665_v40 = vpack.c.bf16 %v4448_v5, %v4384_v45 }
  0xd7   : > { %v4513_v8 = vmax.f32 %v648_v10, 0.0  ;;  %v692_v17 = vsel %vm685_vm10, %v675_v35, %v676_v21 }
  0xd8   : > { %v4612_v34 = vpop.permute.xlu2 %1121 }
  0xd9   : > { %v1397_v50 = vpack.c.bf16 %v4513_v8, %v4482_v15 }
  0xda   : > { %v4525_v52 = vpop.permute.xlu1 %1069  ;;  %v622_v53 = vpop.f32.mrf.mxu0 }
  0xdb   : > { %v637_v55 = vmul.f32 %v4323_v36, %v622_v53  ;;  %v894_v53 = vrot.slane %v4382_v7, 1 }
  0xdd   : > { %v4530_v2 = vpop.permute.xlu0 %1066  ;;  %v649_v0 = vadd.f32 %v4346_v61, %v637_v55  ;;  %v895_v55 = vrot.slane %v4384_v45, 1 }
  0xdf   : > { %v4536_v51 = vmax.f32 %v649_v0, 0.0  ;;  %v4632_v25 = vsel %vm902_vm11, %v894_v53, %v895_v55 }
  0xe1   : > { %v4546_v54 = vpack.c.bf16 %v4536_v51, %v4513_v8  ;;  %v681_v32 = vrot.slane %v4536_v51, 7 }
  0xe2   : > { %v4548_v6 = vpop.permute.xlu1 %1208  ;;  %v624_v9 = vpop.f32.mrf.mxu0 }
  0xe3   : > { %v638_v4 = vmul.f32 %v4323_v36, %v624_v9  ;;  %3019 = vmatmul.msk.bf16.gmra.mxu3 %vm3017_vm2, %v4546_v54  ;;  %v3236_v9 = vld [vmem:[%s5081_s6 + $0x120] sm:$0xff]  ;;  %vm880_vm2 = vcmp.eq.s32.totalorder %v4404_v38, 1  ;;  %v3255_v38 = vld [vmem:[%s5081_s6 + $0x1b8] sm:$0xff] }
  0xe4   : > { %2106 = vmatpush.bf16.msrb.mxu1 %v3236_v9  ;;  %2161 = vmatpush.bf16.msra.mxu3 %v3255_v38 }
  0xe5   : > { %v4554_v12 = vpop.permute.xlu0 %1115  ;;  %v650_v14 = vadd.f32 %v4346_v61, %v638_v4  ;;  %v3241_v61 = vld [vmem:[%s5081_s6 + $0x148] sm:$0xff] }
  0xe6   : > { %2138 = vmatpush.bf16.msrb.mxu2 %v3241_v61 }
  0xe7   : > { %v4563_v36 = vmax.f32 %v650_v14, 0.0 }
  0xe8   : > { %2107 = vmatpush.bf16.msrb.mxu1 %v3235_v43  ;;  %v908_v43 = vsel %vm902_vm11, %v895_v55, %v896_v27  ;;  %v3259_v55 = vld [vmem:[%s5081_s6 + $0x1d8] sm:$0xff] }
  0xe9   : > { %v4574_v59 = vpack.c.bf16 %v4382_v7, %v4563_v36  ;;  %v682_v10 = vrot.slane %v4563_v36, 7  ;;  %v901_v3 = vrot.slane %v4563_v36, 1  ;;  %v1406_v44 = vpack.c.bf16 %v4563_v36, %v4536_v51  ;;  %v3266_v7 = vld [vmem:[%s5081_s6 + $0x210] sm:$0xff] }
  0xea   : > { %v4584_v41 = vpop.permute.xlu1 %1275  ;;  %2139 = vmatpush.bf16.msrb.mxu2 %v3240_v62  ;;  %v897_v62 = vrot.slane %v4450_v18, 1 }
  0xeb   : > { %3010 = vmatmul.msk.bf16.vlgmr.msra.gmra.mxu2 %vm3008_vm13, %v4574_v59  ;;  %v4593_v60 = vsel %vm685_vm10, %v681_v32, %v682_v10  ;;  %v693_v56 = vsel %vm685_vm10, %v682_v10, %v675_v35  ;;  %v4621_v33 = vsel %vm902_vm11, %v901_v3, %v894_v53  ;;  %v3262_v35 = vld [vmem:[%s5081_s6 + $0x1f0] sm:$0xff]  ;;  %v4658_v10 = vpop.permute.xlu2 %1278  ;;  %v690_v53 = vsel %vm685_vm10, %v677_v29, %v678_v63  ;;  %vm3011_vm13 = vmpackc.low %vm881_vm9, %vm880_vm2 }
  0xec   : > { %v4602_v0 = vpack.c.bf16 %v693_v56, %v4593_v60  ;;  %v3033_v57 = vpack.c.bf16 %v692_v17, %v693_v56  ;;  %v4636_v4 = vpack.c.bf16 %v4632_v25, %v4621_v33  ;;  %v691_v56 = vsel %vm685_vm10, %v676_v21, %v677_v29  ;;  %2191 = vmatpush.bf16.msra.mxu0 %v3262_v35  ;;  %v3234_v29 = vld [vmem:[%s5081_s6 + $0x110] sm:$0xff] }
  0xed   : > { %v4606_v49 = vpop.permute.xlu0 %1272  ;;  %v4679_v21 = vpack.c.bf16 %v691_v56, %v692_v17  ;;  %v3036_v9 = vpack.c.bf16 %v690_v53, %v691_v56  ;;  %v4697_v17 = vsel %vm902_vm11, %v896_v27, %v897_v62  ;;  %2108 = vmatpush.bf16.msrb.mxu1 %v3234_v29  ;;  %v679_v27 = vrot.slane %v4482_v15, 7  ;;  %v3233_v29 = vld [vmem:[%s5081_s6 + $0x108] sm:$0xff] }
  0xee   : > { %2998 = vmatmul.msk.bf16.vlgmr.msra.gmra.mxu1 %vm4205_vm4, %v4602_v0  ;;  %3034 = vmatmul.msk.bf16.vlgmr.msrb.gmra.mxu0 %vm3032_vm6, %v3033_v57  ;;  %vm3020_vm4 = vmpackc.low %vm984_vm15, %vm983_vm1  ;;  %vm5323_vm15 = vnez %v5277_v19  ;;  %vm986_vm1 = vcmp.eq.s32.totalorder %v4240_v24, 1  ;;  %v3260_v19 = vld [vmem:[%s5081_s6 + $0x1e0] sm:$0xff]  ;;  %v3253_v24 = vld [vmem:[%s5081_s6 + $0x1a8] sm:$0xff] }
  0xef   : > { %vm3035_vm6 = vmpackc.low %vm1074_vm7, %vm1073_vm8  ;;  %vm1135_vm7 = vcmp.eq.s32.totalorder %v4480_v48, 1  ;;  %vm1136_vm8 = vcmp.eq.s32.totalorder %v4554_v12, 1  ;;  %v689_v48 = vsel %vm685_vm10, %v678_v63, %v679_v27  ;;  %v898_v63 = vrot.slane %v4482_v15, 1 }
  0xf0   : > { %2192 = vmatpush.bf16.msra.mxu0 %v3261_v22  ;;  %v680_v22 = vrot.slane %v4513_v8, 7 }
  0xf1   : > { %2109 = vmatpush.bf16.msrb.mxu1 %v3233_v29  ;;  %v3256_v29 = vld [vmem:[%s5081_s6 + $0x1c0] sm:$0xff]  ;;  %v906_v31 = vsel %vm902_vm11, %v897_v62, %v898_v63 }
  0xf2   : > { %v4638_v11 = vpop.permute.xlu1 %1118  ;;  %v688_v12 = vsel %vm685_vm10, %v679_v27, %v680_v22  ;;  %v3257_v27 = vld [vmem:[%s5081_s6 + $0x1c8] sm:$0xff]  ;;  %v3248_v62 = vld [vmem:[%s5081_s6 + $0x180] sm:$0xff] }
  0xf3   : > { %3022 = vmatmul.msk.bf16.vlgmr.msrb.gmra.mxu3 %vm3020_vm4, %v4636_v4  ;;  %vm985_vm4 = vcmp.eq.s32.totalorder %v4358_v28, 1  ;;  %v4715_v28 = vpack.c.bf16 %v4697_v17, %v908_v43  ;;  %v1346_v35 = vpop.permute.xlu2 %1345 }
  0xf4   : > { %2193 = vmatpush.bf16.msra.mxu0 %v3260_v19  ;;  %v3258_v19 = vld [vmem:[%s5081_s6 + $0x1d0] sm:$0xff] }
  0xf5   : > { %v1340_v14 = vpop.permute.xlu0 %1339 }
  0xf6   : > { %vm1360_vm0 = vcmp.eq.s32.totalorder %v1340_v14, 1  ;;  %v3254_v14 = vld [vmem:[%s5081_s6 + $0x1b0] sm:$0xff] }
  0xf7   : > { %vm4648_vm3 = vmpackc.low %vm1360_vm0, %vm1359_vm12  ;;  %2162 = vmatpush.bf16.msra.mxu3 %v3254_v14  ;;  %vm1362_vm0 = vcmp.eq.s32.totalorder %v1346_v35, 1  ;;  %v3252_v14 = vld [vmem:[%s5081_s6 + $0x1a0] sm:$0xff]  ;;  %v3045_v35 = vpack.c.bf16 %v908_v43, %v4632_v25  ;;  %v4755_v25 = vpack.c.bf16 %v689_v48, %v690_v53  ;;  %v3039_v43 = vpack.c.bf16 %v688_v12, %v689_v48 }
  0xf8   : > { %vm3023_vm12 = vmpackc.low %vm986_vm1, %vm985_vm4  ;;  %2194 = vmatpush.bf16.msra.mxu0 %v3259_v55  ;;  %v899_v55 = vrot.slane %v4513_v8, 1  ;;  %vm988_vm4 = vcmp.eq.s32.totalorder %v4354_v1, 1  ;;  %v3249_v1 = vld [vmem:[%s5081_s6 + $0x188] sm:$0xff]  ;;  %v3048_v48 = vpack.c.bf16 %v906_v31, %v4697_v17 }
  0xfa   : > { %v4675_v57 = vpop.permute.xlu1 %1217  ;;  %v905_v53 = vsel %vm902_vm11, %v898_v63, %v899_v55  ;;  %v3270_v63 = vld [vmem:[%s5081_s6 + $0x230] sm:$0xff] }
  0xfb   : > { %3013 = vmatmul.msk.bf16.gmra.mxu2 %vm3011_vm13, %v4665_v40  ;;  %2163 = vmatpush.bf16.msra.mxu3 %v3253_v24  ;;  %v3251_v24 = vld [vmem:[%s5081_s6 + $0x198] sm:$0xff]  ;;  %vm1076_vm13 = vcmp.eq.s32.totalorder %v4463_v20, 1 }
  0xfc   : > { %2195 = vmatpush.bf16.msra.mxu0 %v3258_v19 }
  0xfd   : > { %v4685_v26 = vpop.permute.xlu0 %1214 }
  0xfe   : > { %3001 = vmatmul.msk.bf16.gmra.mxu1 %vm5323_vm15, %v4679_v21  ;;  %3037 = vmatmul.msk.bf16.gmra.mxu0 %vm3035_vm6, %v3036_v9  ;;  %vm1075_vm6 = vcmp.eq.s32.totalorder %v4474_v16, 1  ;;  %vm3044_vm15 = vmpackc.low %vm1136_vm8, %vm1135_vm7  ;;  %v3250_v16 = vld [vmem:[%s5081_s6 + $0x190] sm:$0xff]  ;;  %vm1078_vm7 = vcmp.eq.s32.totalorder %v4525_v52, 1  ;;  %vm1077_vm8 = vcmp.eq.s32.totalorder %v4530_v2, 1  ;;  %v3269_v2 = vld [vmem:[%s5081_s6 + $0x228] sm:$0xff] }
  0xff   : > { %2164 = vmatpush.bf16.msra.mxu3 %v3252_v14  ;;  %vm3038_vm1 = vmpackc.low %vm1076_vm13, %vm1075_vm6  ;;  %v3232_v14 = vld [vmem:[%s5081_s6 + $0x100] sm:$0xff] }
 0x100   : > { %2196 = vmatpush.bf16.msra.mxu0 %v3257_v27  ;;  %2110 = vmatpush.bf16.msrb.mxu1 %v3232_v14  ;;  %v900_v27 = vrot.slane %v4536_v51, 1 }
 0x102   : > { %v1343_v38 = vpop.permute.xlu1 %1342  ;;  %v903_v52 = vsel %vm902_vm11, %v900_v27, %v901_v3  ;;  %v904_v37 = vsel %vm902_vm11, %v899_v55, %v900_v27  ;;  %v1221_v3 = vpop.permute.xlu2 %1220  ;;  %vm1295_vm11 = vcmp.eq.s32.totalorder %v4606_v49, 1 }
 0x103   : > { %vm1361_vm2 = vcmp.eq.s32.totalorder %v1343_v38, 1  ;;  %3025 = vmatmul.msk.bf16.gmra.mxu3 %vm3023_vm12, %v4715_v28  ;;  %vm987_vm12 = vcmp.eq.s32.totalorder %v4430_v47, 1  ;;  %v4786_v47 = vpack.c.bf16 %v905_v53, %v906_v31  ;;  %v3054_v45 = vpack.c.bf16 %v4621_v33, %v903_v52 }
 0x104   : > { %vm4718_vm9 = vmpackc.low %vm1362_vm0, %vm1361_vm2  ;;  %2165 = vmatpush.bf16.msra.mxu3 %v3251_v24  ;;  %2197 = vmatpush.bf16.msra.mxu0 %v3256_v29  ;;  %vm1138_vm0 = vcmp.eq.s32.totalorder %v4612_v34, 1  ;;  %vm1137_vm2 = vcmp.eq.s32.totalorder %v4638_v11, 1 }
 0x105   : > { %v4725_v9 = vpop.permute.xlu0 %1281  ;;  %vm3047_vm13 = vmpackc.low %vm1138_vm0, %vm1137_vm2  ;;  %vm1296_vm2 = vcmp.eq.s32.totalorder %v4584_v41, 1 }
 0x108   : > { %2166 = vmatpush.bf16.msra.mxu3 %v3250_v16 }
 0x10a   : > { %v4752_v38 = vpop.permute.xlu1 %1127  ;;  %v1288_v46 = vpop.permute.xlu2 %1287 }
 0x10b   : > { %3046 = vmatmul.msk.bf16.vlgmr.msrb.gmra.mxu2 %vm3044_vm15, %v3045_v35  ;;  %v3271_v35 = vld [vmem:[%s5081_s6 + $0x238] sm:$0xff] }
 0x10c   : > { %2167 = vmatpush.bf16.msra.mxu3 %v3249_v1  ;;  %2219 = vmatpush.bf16.msra.mxu1 %v3271_v35 }
 0x10d   : > { %v4761_v20 = vpop.permute.xlu0 %1124 }
 0x10e   : > { %3004 = vmatmul.msk.bf16.gmra.mxu1 %vm4254_vm14, %v4755_v25  ;;  %3040 = vmatmul.msk.bf16.gmra.mxu0 %vm3038_vm1, %v3039_v43  ;;  %vm3026_vm14 = vmpackc.low %vm988_vm4, %vm987_vm12  ;;  %v687_v43 = vsel %vm685_vm10, %v680_v22, %v681_v32  ;;  %vm990_vm1 = vcmp.eq.s32.totalorder %v4440_v13, 1  ;;  %vm989_vm4 = vcmp.eq.s32.totalorder %v4500_v23, 1  ;;  %v4833_v22 = vpack.c.bf16 %v903_v52, %v904_v37  ;;  %v3268_v13 = vld [vmem:[%s5081_s6 + $0x220] sm:$0xff] }
 0x10f   : > { %v4811_v11 = vpack.c.bf16 %v687_v43, %v688_v12  ;;  %v3042_v17 = vpack.c.bf16 %v4593_v60, %v687_v43  ;;  %vm3041_vm10 = vmpackc.low %vm1078_vm7, %vm1077_vm8  ;;  %vm1139_vm0 = vcmp.eq.s32.totalorder %v4761_v20, 1  ;;  %v3051_v23 = vpack.c.bf16 %v904_v37, %v905_v53  ;;  %v3267_v12 = vld [vmem:[%s5081_s6 + $0x218] sm:$0xff] }
 0x110   : > { %2168 = vmatpush.bf16.msra.mxu3 %v3248_v62  ;;  %2220 = vmatpush.bf16.msra.mxu1 %v3270_v63  ;;  %vm3068_vm8 = vmpackc.low %vm1296_vm2, %vm1295_vm11  ;;  %vm1234_vm2 = vcmp.eq.s32.totalorder %v4675_v57, 1  ;;  %vm1233_vm11 = vcmp.eq.s32.totalorder %v4685_v26, 1 }
 0x112   : > { %v4788_v19 = vpop.permute.xlu1 %1284  ;;  %v1131_v49 = vpop.permute.xlu2 %1130 }
 0x113   : > { %3028 = vmatmul.msk.bf16.gmra.mxu3 %vm3026_vm14, %v4786_v47  ;;  %vm1140_vm14 = vcmp.eq.s32.totalorder %v4752_v38, 1 }
 0x114   : > { %2221 = vmatpush.bf16.msra.mxu1 %v3269_v2  ;;  %vm3050_vm7 = vmpackc.low %vm1140_vm14, %vm1139_vm0  ;;  %vm1297_vm14 = vcmp.eq.s32.totalorder %v4658_v10, 1 }
 0x115   : > { %v4791_v24 = vpop.permute.xlu0 %1223 }
 0x118   : > { %2222 = vmatpush.bf16.msra.mxu1 %v3268_v13 }
 0x11a   : > { %v1352_v34 = vpop.permute.xlu1 %1351 }
 0x11b   : > { %3049 = vmatmul.msk.bf16.gmra.mxu2 %vm3047_vm13, %v3048_v48  ;;  %vm1364_vm6 = vcmp.eq.s32.totalorder %v1352_v34, 1  ;;  %vm1232_vm13 = vcmp.eq.s32.totalorder %v4521_v42, 1  ;;  %v3264_v42 = vld [vmem:[%s5081_s6 + $0x200] sm:$0xff] }
 0x11c   : > { %2223 = vmatpush.bf16.msra.mxu1 %v3267_v12 }
 0x11d   : > { %v1349_v32 = vpop.permute.xlu0 %1348 }
 0x11e   : > { %vm1363_vm15 = vcmp.eq.s32.totalorder %v1349_v32, 1  ;;  %3007 = vmatmul.msk.bf16.gmra.mxu1 %vm4282_vm5, %v4811_v11  ;;  %3043 = vmatmul.msk.bf16.gmra.mxu0 %vm3041_vm10, %v3042_v17  ;;  %vm3029_vm5 = vmpackc.low %vm990_vm1, %vm989_vm4  ;;  %vm1141_vm1 = vcmp.eq.s32.totalorder %v1131_v49, 1  ;;  %vm1298_vm4 = vcmp.eq.s32.totalorder %v4725_v9, 1 }
 0x11f   : > { %vm4827_vm12 = vmpackc.low %vm1364_vm6, %vm1363_vm15  ;;  %vm1231_vm6 = vcmp.eq.s32.totalorder %v4548_v6, 1  ;;  %v1230_v6 = vpop.permute.xlu2 %1229 }
 0x120   : > { %vm3056_vm10 = vmpackc.low %vm1232_vm13, %vm1231_vm6  ;;  %2224 = vmatpush.bf16.msra.mxu1 %v3266_v7  ;;  %vm1300_vm13 = vcmp.eq.s32.totalorder %v1288_v46, 1 }
 0x121   : > { %vm3071_vm0 = vmpackc.low %vm1298_vm4, %vm1297_vm14 }
 0x122   : > { %v1227_v5 = vpop.permute.xlu1 %1226 }
 0x123   : > { %3031 = vmatmul.msk.bf16.gmra.mxu3 %vm3029_vm5, %v4833_v22 }
 0x125   : > { %v1134_v41 = vpop.permute.xlu0 %1133 }
 0x126   : > { %vm1142_vm15 = vcmp.eq.s32.totalorder %v1134_v41, 1 }
 0x127   : > { %vm3053_vm5 = vmpackc.low %vm1142_vm15, %vm1141_vm1  ;;  %vm1235_vm15 = vcmp.eq.s32.totalorder %v1221_v3, 1  ;;  %v1355_v17 = vpop.permute.xlu2 %1354 }
 0x12b   : > { %3052 = vmatmul.msk.bf16.gmra.mxu2 %vm3050_vm7, %v3051_v23  ;;  %vm3059_vm7 = vmpackc.low %vm1234_vm2, %vm1233_vm11  ;;  %vm1238_vm2 = vcmp.eq.s32.totalorder %v1230_v6, 1 }
 0x12e   : > { %2111 = vmatmul.bf16.vlgmr.msrb.gmra.mxu1 %v1379_v30  ;;  %3070 = vmatmul.msk.bf16.vlgmr.msra.gmra.mxu0 %vm3068_vm8, %v4665_v40  ;;  %v3265_v30 = vld [vmem:[%s5081_s6 + $0x208] sm:$0xff]  ;;  %vm1299_vm8 = vcmp.eq.s32.totalorder %v4788_v19, 1 }
 0x12f   : > { %2225 = vmatpush.bf16.msra.mxu1 %v3265_v30  ;;  %vm3074_vm6 = vmpackc.low %vm1300_vm13, %vm1299_vm8 }
 0x133   : > { %3058 = vmatmul.msk.bf16.vlgmr.msra.gmra.mxu3 %vm3056_vm10, %v4679_v21  ;;  %2226 = vmatpush.bf16.msra.mxu1 %v3264_v42  ;;  %vm1236_vm10 = vcmp.eq.s32.totalorder %v4791_v24, 1 }
 0x134   : > { %vm3062_vm1 = vmpackc.low %vm1236_vm10, %vm1235_vm15 }
 0x13b   : > { %3055 = vmatmul.msk.bf16.gmra.mxu2 %vm3053_vm5, %v3054_v45 }
 0x13e   : > { %2116 = vmatmul.bf16.gmra.mxu1 %v1388_v58  ;;  %3073 = vmatmul.msk.bf16.gmra.mxu0 %vm3071_vm0, %v4498_v39  ;;  %v1294_v58 = vpop.permute.xlu1 %1293  ;;  %v1291_v39 = vpop.permute.xlu0 %1290  ;;  %vm1237_vm0 = vcmp.eq.s32.totalorder %v1227_v5, 1 }
 0x13f   : > { %vm1302_vm4 = vcmp.eq.s32.totalorder %v1294_v58, 1  ;;  %vm1301_vm5 = vcmp.eq.s32.totalorder %v1291_v39, 1  ;;  %vm3065_vm11 = vmpackc.low %vm1238_vm2, %vm1237_vm0 }
 0x140   : > { %vm3077_vm14 = vmpackc.low %vm1302_vm4, %vm1301_vm5 }
 0x143   : > { %3061 = vmatmul.msk.bf16.gmra.mxu3 %vm3059_vm7, %v4755_v25 }
 0x146   : > { %v1358_v34 = vpop.permute.xlu0 %1357 }
 0x14e   : > { %2121 = vmatmul.bf16.gmra.mxu1 %v1397_v50  ;;  %3076 = vmatmul.msk.bf16.gmra.mxu0 %vm3074_vm6, %v4546_v54 }
 0x153   : > { %3064 = vmatmul.msk.bf16.gmra.mxu3 %vm3062_vm1, %v4811_v11 }
 0x156   : > { %v2035_v18 = vpop.f32.mrf.mxu3 }
 0x15e   : > { %v2037_v33 = vpop.f32.mrf.mxu3  ;;  %2126 = vmatmul.bf16.gmra.mxu1 %v1406_v44  ;;  %3079 = vmatmul.msk.bf16.gmra.mxu0 %vm3077_vm14, %v4574_v59 }
 0x163   : > { %3067 = vmatmul.msk.bf16.gmra.mxu3 %vm3065_vm11, %v4602_v0 }
 0x166   : > { %v2040_v15 = vpop.f32.mrf.mxu3 }
 0x16b   : > { %v1996_v8 = vpop.f32.mrf.mxu1  ;;  %v2083_v50 = vpop.f32.mrf.mxu0 }
 0x16e   : > { %v2025_v54 = vpop.f32.mrf.mxu2  ;;  %v2042_v10 = vpop.f32.mrf.mxu3  ;;  %3082 = vmatmul.msk.bf16.vlgmr.msra.gmra.mxu1 %vm4648_vm3, %v4715_v28  ;;  %vm1366_vm3 = vcmp.eq.s32.totalorder %v1358_v34, 1 }
 0x16f   : > { %v2026_v40 = vadd.f32 %v2025_v54, %v1996_v8 }
 0x173   : > { %v1998_v57 = vpop.f32.mrf.mxu1  ;;  %v2085_v59 = vpop.f32.mrf.mxu0 }
 0x176   : > { %v2027_v51 = vpop.f32.mrf.mxu2  ;;  %v2054_v36 = vpop.f32.mrf.mxu3 }
 0x177   : > { %v2055_v44 = vadd.f32 %v2054_v36, %v2026_v40  ;;  %v2028_v9 = vadd.f32 %v2027_v51, %v1998_v57  ;;  %v3279_v51 = vld [vmem:[%s5084_s9 + $0x38] sm:$0xff] }
 0x178   : > { %2360 = vmatpush.bf16.msra.mxu2 %v3279_v51 }
 0x179   : > { %v2084_v21 = vadd.f32 %v2083_v50, %v2055_v44 }
 0x17b   : > { %v2001_v26 = vpop.f32.mrf.mxu1  ;;  %v2088_v20 = vpop.f32.mrf.mxu0 }
 0x17e   : > { %v2056_v38 = vpop.f32.mrf.mxu3  ;;  %3085 = vmatmul.msk.bf16.gmra.mxu1 %vm4718_vm9, %v4786_v47  ;;  %v2030_v55 = vpop.f32.mrf.mxu2  ;;  %vm1365_vm9 = vcmp.eq.s32.totalorder %v1355_v17, 1 }
 0x17f   : > { %v2057_v0 = vadd.f32 %v2056_v38, %v2028_v9  ;;  %v2031_v28 = vadd.f32 %v2030_v55, %v2001_v26  ;;  %vm3089_vm7 = vmpackc.low %vm1366_vm3, %vm1365_vm9  ;;  %v3278_v26 = vld [vmem:[%s5084_s9 + $0x30] sm:$0xff] }
 0x180   : > { %2361 = vmatpush.bf16.msra.mxu2 %v3278_v26 }
 0x181   : > { %v2086_v25 = vadd.f32 %v2085_v59, %v2057_v0 }
 0x183   : > { %v2003_v61 = vpop.f32.mrf.mxu1  ;;  %v2090_v1 = vpop.f32.mrf.mxu0 }
 0x186   : > { %v2059_v16 = vpop.f32.mrf.mxu3  ;;  %v2032_v29 = vpop.f32.mrf.mxu2 }
 0x187   : > { %v2060_v53 = vadd.f32 %v2059_v16, %v2031_v28  ;;  %v2033_v24 = vadd.f32 %v2032_v29, %v2003_v61 }
 0x189   : > { %v2089_v14 = vadd.f32 %v2088_v20, %v2060_v53  ;;  %v3276_v53 = vld [vmem:[%s5084_s9 + $0x20] sm:$0xff] }
 0x18b   : > { %v2006_v31 = vpop.f32.mrf.mxu1  ;;  %v2093_v43 = vpop.f32.mrf.mxu0 }
 0x18c   : > { %v2036_v19 = vadd.f32 %v2035_v18, %v2006_v31  ;;  %v3275_v31 = vld [vmem:[%s5084_s9 + $0x18] sm:$0xff] }
 0x18e   : > { %v2061_v62 = vpop.f32.mrf.mxu3  ;;  %3088 = vmatmul.msk.bf16.gmra.mxu1 %vm4827_vm12, %v4833_v22 }
 0x18f   : > { %v2062_v56 = vadd.f32 %v2061_v62, %v2033_v24 }
 0x191   : > { %v2091_v47 = vadd.f32 %v2090_v1, %v2062_v56 }
 0x193   : > { %v2008_v35 = vpop.f32.mrf.mxu1  ;;  %v2095_v37 = vpop.f32.mrf.mxu0 }
 0x194   : > { %v2038_v48 = vadd.f32 %v2037_v33, %v2008_v35  ;;  %v2141_v33 = vpop.f32.mrf.mxu2 }
 0x196   : > { %v2064_v63 = vpop.f32.mrf.mxu3 }
 0x197   : > { %v2065_v11 = vadd.f32 %v2064_v63, %v2036_v19 }
 0x199   : > { %v2094_v27 = vadd.f32 %v2093_v43, %v2065_v11 }
 0x19b   : > { %v2011_v32 = vpop.f32.mrf.mxu1  ;;  %v2098_v5 = vpop.f32.mrf.mxu0 }
 0x19c   : > { %v2041_v52 = vadd.f32 %v2040_v15, %v2011_v32 }
 0x19e   : > { %v2066_v2 = vpop.f32.mrf.mxu3  ;;  %3091 = vmatmul.msk.bf16.gmra.mxu1 %vm3089_vm7, %v4636_v4 }
 0x19f   : > { %v2067_v60 = vadd.f32 %v2066_v2, %v2038_v48 }
 0x1a1   : > { %v2096_v22 = vadd.f32 %v2095_v37, %v2067_v60 }
 0x1a3   : > { %v2013_v3 = vpop.f32.mrf.mxu1  ;;  %v4896_v4 = vpop.f32.mrf.mxu0 }
 0x1a4   : > { %v4894_v13 = vadd.f32 %v2042_v10, %v2013_v3  ;;  %v2143_v10 = vpop.f32.mrf.mxu2 }
 0x1a6   : > { %v2069_v45 = vpop.f32.mrf.mxu3 }
 0x1a7   : > { %v2070_v56 = vadd.f32 %v2069_v45, %v2041_v52  ;;  %v3318_v45 = vld [vmem:[%s5082_s7] ss:$0 sm:$0xff] }
 0x1a9   : > { %v2099_v32 = vadd.f32 %v2098_v5, %v2070_v56  ;;  %v3274_v5 = vld [vmem:[%s5084_s9 + $0x10] sm:$0xff] }
 0x1ab   : > { %v2112_v23 = vpop.f32.mrf.mxu1  ;;  %v2199_v50 = vpop.f32.mrf.mxu0 }
 0x1ac   : > { %v2113_v46 = vadd.f32 %v2112_v23, %v2084_v21  ;;  %v2146_v44 = vpop.f32.mrf.mxu2 }
 0x1ae   : > { %v2071_v18 = vpop.f32.mrf.mxu3  ;;  %v2142_v62 = vadd.f32 %v2141_v33, %v2113_v46 }
 0x1af   : > { %v2072_v52 = vadd.f32 %v2071_v18, %v4894_v13  ;;  %v3273_v13 = vld [vmem:[%s5084_s9 + $0x8] sm:$0xff] }
 0x1b1   : > { %v2101_v18 = vadd.f32 %v4896_v4, %v2072_v52  ;;  %v3272_v4 = vld [vmem:[%s5084_s9] sm:$0xff] }
 0x1b3   : > { %v2114_v12 = vpop.f32.mrf.mxu1  ;;  %v2201_v36 = vpop.f32.mrf.mxu0 }
 0x1b4   : > { %v2115_v41 = vadd.f32 %v2114_v12, %v2086_v25  ;;  %v2148_v38 = vpop.f32.mrf.mxu2  ;;  %v3277_v25 = vld [vmem:[%s5084_s9 + $0x28] sm:$0xff] }
 0x1b5   : > { %2362 = vmatpush.bf16.msra.mxu2 %v3277_v25 }
 0x1b6   : > { %v2170_v15 = vpop.f32.mrf.mxu3  ;;  %v2144_v24 = vadd.f32 %v2143_v10, %v2115_v41  ;;  %v3319_v10 = vld [vmem:[%s5083_s8] ss:$0 sm:$0xff] }
 0x1b7   : > { %v2171_v48 = vadd.f32 %v2170_v15, %v2142_v62  ;;  %v3287_v62 = vld [vmem:[%s5086_s11 + $0x38] sm:$0xff] }
 0x1b8   : > { %2440 = vmatpush.bf16.msrb.mxu3 %v3287_v62 }
 0x1b9   : > { %2363 = vmatpush.bf16.msra.mxu2 %v3276_v53  ;;  %v2200_v37 = vadd.f32 %v2199_v50, %v2171_v48  ;;  %v3286_v48 = vld [vmem:[%s5086_s11 + $0x30] sm:$0xff] }
 0x1bb   : > { %v2117_v49 = vpop.f32.mrf.mxu1  ;;  %v2204_v9 = vpop.f32.mrf.mxu0 }
 0x1bc   : > { %v2118_v7 = vadd.f32 %v2117_v49, %v2089_v14  ;;  %v2151_v28 = vpop.f32.mrf.mxu2  ;;  %2441 = vmatpush.bf16.msrb.mxu3 %v3286_v48 }
 0x1bd   : > { %2364 = vmatpush.bf16.msra.mxu2 %v3275_v31 }
 0x1be   : > { %v2172_v40 = vpop.f32.mrf.mxu3  ;;  %v2147_v35 = vadd.f32 %v2146_v44, %v2118_v7 }
 0x1c1   : > { %2365 = vmatpush.bf16.msra.mxu2 %v3274_v5  ;;  %v3282_v5 = vld [vmem:[%s5086_s11 + $0x10] sm:$0xff] }
 0x1c3   : > { %v2119_v30 = vpop.f32.mrf.mxu1  ;;  %v2206_v20 = vpop.f32.mrf.mxu0 }
 0x1c4   : > { %v2120_v42 = vadd.f32 %v2119_v30, %v2091_v47  ;;  %v2153_v1 = vpop.f32.mrf.mxu2  ;;  %v2173_v47 = vadd.f32 %v2172_v40, %v2144_v24 }
 0x1c5   : > { %2366 = vmatpush.bf16.msra.mxu2 %v3273_v13  ;;  %v3280_v13 = vld [vmem:[%s5086_s11] sm:$0xff] }
 0x1c6   : > { %v2175_v59 = vpop.f32.mrf.mxu3  ;;  %v2149_v34 = vadd.f32 %v2148_v38, %v2120_v42  ;;  %v2202_v2 = vadd.f32 %v2201_v36, %v2173_v47 }
 0x1c7   : > { %v2176_v63 = vadd.f32 %v2175_v59, %v2147_v35 }
 0x1c9   : > { %v2205_v46 = vadd.f32 %v2204_v9, %v2176_v63  ;;  %2367 = vmatpush.bf16.msra.mxu2 %v3272_v4  ;;  %v3292_v4 = vld [vmem:[%s5088_s13 + $0x20] sm:$0xff] }
 0x1cb   : > { %v2122_v58 = vpop.f32.mrf.mxu1  ;;  %v2209_v14 = vpop.f32.mrf.mxu0 }
 0x1cc   : > { %v2123_v39 = vadd.f32 %v2122_v58, %v2094_v27 }
 0x1ce   : > { %v2177_v0 = vpop.f32.mrf.mxu3  ;;  %v2152_v27 = vadd.f32 %v2151_v28, %v2123_v39 }
 0x1cf   : > { %v2178_v17 = vadd.f32 %v2177_v0, %v2149_v34 }
 0x1d1   : > { %v2207_v42 = vadd.f32 %v2206_v20, %v2178_v17 }
 0x1d3   : > { %v2124_v6 = vpop.f32.mrf.mxu1  ;;  %v2211_v11 = vpop.f32.mrf.mxu0 }
 0x1d4   : > { %v2125_v8 = vadd.f32 %v2124_v6, %v2096_v22  ;;  %v2156_v22 = vpop.f32.mrf.mxu2 }
 0x1d6   : > { %v2180_v16 = vpop.f32.mrf.mxu3  ;;  %v2154_v60 = vadd.f32 %v2153_v1, %v2125_v8 }
 0x1d7   : > { %v2181_v3 = vadd.f32 %v2180_v16, %v2152_v27 }
 0x1d9   : > { %v2210_v15 = vadd.f32 %v2209_v14, %v2181_v3 }
 0x1db   : > { %v2127_v54 = vpop.f32.mrf.mxu1  ;;  %v2214_v36 = vpop.f32.mrf.mxu0 }
 0x1dc   : > { %v2128_v23 = vadd.f32 %v2127_v54, %v2099_v32  ;;  %v2158_v9 = vpop.f32.mrf.mxu2 }
 0x1de   : > { %v2182_v19 = vpop.f32.mrf.mxu3  ;;  %v2157_v39 = vadd.f32 %v2156_v22, %v2128_v23 }
 0x1df   : > { %v2183_v49 = vadd.f32 %v2182_v19, %v2154_v60 }
 0x1e1   : > { %v2212_v8 = vadd.f32 %v2211_v11, %v2183_v49 }
 0x1e3   : > { %v4898_v57 = vpop.f32.mrf.mxu1 }
 0x1e4   : > { %v2130_v44 = vadd.f32 %v4898_v57, %v2101_v18 }
 0x1e6   : > { %v2185_v12 = vpop.f32.mrf.mxu3 }
 0x1e7   : > { %v2186_v50 = vadd.f32 %v2185_v12, %v2157_v39 }
 0x1e9   : > { %v2215_v20 = vadd.f32 %v2214_v36, %v2186_v50  ;;  %v3295_v50 = vld [vmem:[%s5088_s13 + $0x38] sm:$0xff] }
 0x1ea   : > { %2535 = vmatpush.bf16.msrb.mxu2 %v3295_v50 }
 0x1eb   : > { %v2228_v21 = vpop.f32.mrf.mxu1 }
 0x1ec   : > { %v2229_v7 = vadd.f32 %v2228_v21, %v2200_v37  ;;  %v3285_v37 = vld [vmem:[%s5086_s11 + $0x28] sm:$0xff] }
 0x1ed   : > { %2442 = vmatpush.bf16.msrb.mxu3 %v3285_v37 }
 0x1ee   : > { %v2252_v54 = vmul.f32 %v3318_v45, %v2229_v7  ;;  %v2187_v0 = vpop.f32.mrf.mxu3 }
 0x1f0   : > { %v4935_v38 = vadd.f32 %v3319_v10, %v2252_v54  ;;  %v2311_v54 = vld [vmem:[%s5085_s10] sm:$0x1] }
 0x1f2   : > { %v2272_v31 = vmax.f32 %v4935_v38, 0.0 }
 0x1f3   : > { %v2230_v55 = vpop.f32.mrf.mxu1 }
 0x1f4   : > { %v2231_v41 = vadd.f32 %v2230_v55, %v2202_v2 }
 0x1f6   : > { %v2253_v6 = vmul.f32 %v3318_v45, %v2231_v41 }
 0x1f8   : > { %v4930_v59 = vadd.f32 %v3319_v10, %v2253_v6  ;;  %v3281_v6 = vld [vmem:[%s5086_s11 + $0x8] sm:$0xff] }
 0x1fa   : > { %v2273_v57 = vmax.f32 %v4930_v59, 0.0 }
 0x1fb   : > { %v2233_v61 = vpop.f32.mrf.mxu1 }
 0x1fc   : > { %v2234_v30 = vadd.f32 %v2233_v61, %v2205_v46  ;;  %v2159_v61 = vadd.f32 %v2158_v9, %v2130_v44  ;;  %v2280_v56 = vadd.f32 %v2273_v57, %v2272_v31  ;;  %v3284_v46 = vld [vmem:[%s5086_s11 + $0x20] sm:$0xff]  ;;  %v3291_v9 = vld [vmem:[%s5088_s13 + $0x18] sm:$0xff] }
 0x1fd   : > { %2443 = vmatpush.bf16.msrb.mxu3 %v3284_v46 }
 0x1fe   : > { %v2254_v40 = vmul.f32 %v3318_v45, %v2234_v30 }
 0x200   : > { %v4937_v55 = vadd.f32 %v3319_v10, %v2254_v40 }
 0x202   : > { %v2274_v1 = vmax.f32 %v4937_v55, 0.0 }
 0x203   : > { %v2235_v29 = vpop.f32.mrf.mxu1 }
 0x204   : > { %v2236_v33 = vadd.f32 %v2235_v29, %v2207_v42  ;;  %v2188_v29 = vadd.f32 %v2187_v0, %v2159_v61  ;;  %v2281_v63 = vadd.f32 %v2280_v56, %v2274_v1  ;;  %v3290_v0 = vld [vmem:[%s5088_s13 + $0x10] sm:$0xff]  ;;  %v2391_v61 = vld [vmem:[%s5087_s12] sm:$0x1] }
 0x206   : > { %v2255_v21 = vmul.f32 %v3318_v45, %v2236_v33 }
 0x208   : > { %v4940_v16 = vadd.f32 %v3319_v10, %v2255_v21  ;;  %v3294_v21 = vld [vmem:[%s5088_s13 + $0x30] sm:$0xff] }
 0x209   : > { %2536 = vmatpush.bf16.msrb.mxu2 %v3294_v21  ;;  %v3331_v21 = vld [vmem:[%s3677_s20 + $0x28] sm:$0xff] }
 0x20a   : > { %v2275_v47 = vmax.f32 %v4940_v16, 0.0 }
 0x20b   : > { %v2238_v43 = vpop.f32.mrf.mxu1 }
 0x20c   : > { %v2239_v51 = vadd.f32 %v2238_v43, %v2210_v15  ;;  %v2216_v43 = vpop.f32.mrf.mxu0  ;;  %v2282_v32 = vadd.f32 %v2281_v63, %v2275_v47 }
 0x20d   : > { %v2217_v17 = vadd.f32 %v2216_v43, %v2188_v29 }
 0x20e   : > { %v2256_v25 = vmul.f32 %v3318_v45, %v2239_v51 }
 0x210   : > { %v4944_v19 = vadd.f32 %v3319_v10, %v2256_v25  ;;  %v3289_v25 = vld [vmem:[%s5088_s13 + $0x8] sm:$0xff] }
 0x212   : > { %v2276_v34 = vmax.f32 %v4944_v19, 0.0 }
 0x213   : > { %v2240_v58 = vpop.f32.mrf.mxu1 }
 0x214   : > { %v2241_v26 = vadd.f32 %v2240_v58, %v2212_v8  ;;  %v2283_v22 = vadd.f32 %v2282_v32, %v2276_v34 }
 0x216   : > { %v2257_v53 = vmul.f32 %v3318_v45, %v2241_v26  ;;  %v3293_v26 = vld [vmem:[%s5088_s13 + $0x28] sm:$0xff] }
 0x217   : > { %2537 = vmatpush.bf16.msrb.mxu2 %v3293_v26 }
 0x218   : > { %v4954_v35 = vadd.f32 %v3319_v10, %v2257_v53 }
 0x21a   : > { %v2277_v2 = vmax.f32 %v4954_v35, 0.0 }
 0x21b   : > { %v2243_v28 = vpop.f32.mrf.mxu1  ;;  %2538 = vmatpush.bf16.msrb.mxu2 %v3292_v4 }
 0x21c   : > { %v2244_v14 = vadd.f32 %v2243_v28, %v2215_v20  ;;  %v2284_v12 = vadd.f32 %v2283_v22, %v2277_v2  ;;  %v3288_v20 = vld [vmem:[%s5088_s13] sm:$0xff] }
 0x21e   : > { %v2258_v24 = vmul.f32 %v3318_v45, %v2244_v14 }
 0x21f   : > { %2539 = vmatpush.bf16.msrb.mxu2 %v3291_v9 }
 0x220   : > { %v4962_v11 = vadd.f32 %v3319_v10, %v2258_v24 }
 0x222   : > { %v2278_v3 = vmax.f32 %v4962_v11, 0.0 }
 0x223   : > { %v2245_v27 = vpop.f32.mrf.mxu1  ;;  %2540 = vmatpush.bf16.msrb.mxu2 %v3290_v0 }
 0x224   : > { %v2246_v60 = vadd.f32 %v2245_v27, %v2217_v17  ;;  %v2285_v52 = vadd.f32 %v2284_v12, %v2278_v3 }
 0x226   : > { %v2259_v23 = vmul.f32 %v3318_v45, %v2246_v60  ;;  %v3283_v45 = vld [vmem:[%s5086_s11 + $0x18] sm:$0xff] }
 0x227   : > { %2444 = vmatpush.bf16.msrb.mxu3 %v3283_v45  ;;  %2541 = vmatpush.bf16.msrb.mxu2 %v3289_v25 }
 0x228   : > { %v4975_v41 = vadd.f32 %v3319_v10, %v2259_v23 }
 0x22a   : > { %v2279_v49 = vmax.f32 %v4975_v41, 0.0  ;;  %v3327_v41 = vld [vmem:[%s3677_s20 + $0x8] sm:$0xff] }
 0x22b   : > { %2445 = vmatpush.bf16.msrb.mxu3 %v3282_v5  ;;  %2542 = vmatpush.bf16.msrb.mxu2 %v3288_v20  ;;  %v3332_v20 = vld [vmem:[%s3677_s20 + $0x30] sm:$0xff] }
 0x22c   : > { %v2286_v7 = vadd.f32 %v2285_v52, %v2279_v49 }
 0x22e   : > { %v2287_v30 = vrot.slane %v2286_v7, 4 }
 0x22f   : > { %2446 = vmatpush.bf16.msrb.mxu3 %v3281_v6 }
 0x230   : > { %v2288_v42 = vadd.f32 %v2287_v30, %v2286_v7  ;;  %v3328_v30 = vld [vmem:[%s3677_s20 + $0x10] sm:$0xff] }
 0x232   : > { %v2289_v58 = vrot.slane %v2288_v42, 2 }
 0x233   : > { %2447 = vmatpush.bf16.msrb.mxu3 %v3280_v13 }
 0x234   : > { %v2290_v39 = vadd.f32 %v2289_v58, %v2288_v42 }
 0x236   : > { %v2291_v33 = vrot.slane %v2290_v39, 1 }
 0x238   : > { %v2292_v15 = vadd.f32 %v2291_v33, %v2290_v39  ;;  %v3329_v33 = vld [vmem:[%s3677_s20 + $0x18] sm:$0xff] }
 0x23a   : > { %v2293_v18 = vmul.f32 0.015625, %v2292_v15 }
 0x23c   : > { %v2294_v8 = vpack.c.bf16 %v2293_v18, %v2293_v18 }
 0x23e   : > { %2368 = vmatmul.bf16.vlgmr.msra.gmra.mxu2 %v2294_v8 }
 0x2c1   : > { %v2369_v10 = vpop.f32.mrf.mxu2 }
 0x2c2   : > { %v2370_v40 = vadd.f32 %v2369_v10, %v2311_v54  ;;  %v3330_v54 = vld [vmem:[%s3677_s20 + $0x20] sm:$0xff] }
 0x2c4   : > { %v2373_v51 = vmax.f32 %v2370_v40, 0.0 }
 0x2c6   : > { %v2374_v36 = vpack.c.bf16 %v2373_v51, %v2373_v51 }
 0x2c8   : > { %2448 = vmatmul.bf16.vlgmr.msrb.gmra.mxu3 %v2374_v36 }
 0x2c9   : > { %v2371_v44 = vpop.f32.mrf.mxu2 }
 0x34b   : > { %v2449_v28 = vpop.f32.mrf.mxu3 }
 0x34c   : > { %v2450_v53 = vadd.f32 %v2449_v28, %v2391_v61 }
 0x34e   : > { %v2453_v14 = vsub.f32 0.0, %v2450_v53 }
 0x350   : > { %v2454_v29 = vmul.f32 1.442695, %v2453_v14 }
 0x352   : > { %3322 = vpow2.f32 %v2454_v29 }
 0x353   : > { %v2451_v24 = vpop.f32.mrf.mxu3 }
 0x354   : > { %v3333_v24 = vld [vmem:[%s3677_s20 + $0x38] sm:$0xff] }
 0x358   : > { %v3323_v62 = vpop.eup %3322 }
 0x359   : > { %v2456_v56 = vadd.f32 1.0, %v3323_v62 }
 0x35b   : > { %3324 = vrcp.f32 %v2456_v56 }
 0x361   : > { %v3325_v48 = vpop.eup %3324 }
 0x362   : > { %v2458_v43 = vperm.slane %v3325_v48, 0 }
 0x364   : > { %v2459_v63 = vmul.f32 %v2458_v43, %v2272_v31  ;;  %v2460_v17 = vmul.f32 %v2458_v43, %v2273_v57  ;;  %v2461_v32 = vmul.f32 %v2458_v43, %v2274_v1  ;;  %v2462_v60 = vmul.f32 %v2458_v43, %v2275_v47  ;;  %v3320_v31 = vld [vmem:[%s5089_s14] ss:$0 sm:$0xff] }
 0x365   : > { %v2463_v22 = vmul.f32 %v2458_v43, %v2276_v34  ;;  %v2464_v38 = vmul.f32 %v2458_v43, %v2277_v2  ;;  %v2465_v57 = vmul.f32 %v2458_v43, %v2278_v3  ;;  %v2466_v55 = vmul.f32 %v2458_v43, %v2279_v49  ;;  %v3321_v1 = vld [vmem:[%s5090_s15] ss:$0 sm:$0xff] }
 0x366   : > { %v2467_v27 = vpack.c.bf16 %v2460_v17, %v2459_v63  ;;  %v2468_v37 = vpack.c.bf16 %v2462_v60, %v2461_v32  ;;  %v3326_v34 = vld [vmem:[%s3677_s20] sm:$0xff] }
 0x367   : > { %v2469_v59 = vpack.c.bf16 %v2464_v38, %v2463_v22  ;;  %v2470_v16 = vpack.c.bf16 %v2466_v55, %v2465_v57 }
 0x368   : > { %2543 = vmatmul.bf16.vlgmr.msrb.gmra.mxu2 %v2467_v27 }
 0x378   : > { %2548 = vmatmul.bf16.gmra.mxu2 %v2468_v37 }
 0x388   : > { %2553 = vmatmul.bf16.gmra.mxu2 %v2469_v59 }
 0x398   : > { %2558 = vmatmul.bf16.gmra.mxu2 %v2470_v16 }
 0x3eb   : > { %v2544_v19 = vpop.f32.mrf.mxu2 }
 0x3ec   : > { %v2568_v47 = vmul.f32 %v3320_v31, %v2544_v19 }
 0x3ee   : > { %v2580_v35 = vadd.f32 %v3321_v1, %v2568_v47 }
 0x3f0   : > { %v2588_v11 = vadd.f32 %v3326_v34, %v2580_v35 }
 0x3f2   : > { %v2596_v2 = vmax.f32 %v2588_v11, 0.0 }
 0x3f3   : > { %v2546_v3 = vpop.f32.mrf.mxu2 }
 0x3f4   : > { %2604 = vst [vmem:[%s5055_s26] sm:$0xff] %v2596_v2  ;;  %v2569_v23 = vmul.f32 %v3320_v31, %v2546_v3 }
 0x3f6   : > { %v2581_v12 = vadd.f32 %v3321_v1, %v2569_v23 }
 0x3f8   : > { %v2589_v46 = vadd.f32 %v3327_v41, %v2581_v12 }
 0x3fa   : > { %v2597_v52 = vmax.f32 %v2589_v46, 0.0 }
 0x3fb   : > { %v2549_v49 = vpop.f32.mrf.mxu2 }
 0x3fc   : > { %2605 = vst [vmem:[%s5055_s26 + $0x8] sm:$0xff] %v2597_v52  ;;  %v2570_v7 = vmul.f32 %v3320_v31, %v2549_v49 }
 0x3fe   : > { %v2582_v45 = vadd.f32 %v3321_v1, %v2570_v7 }
 0x400   : > { %v2590_v42 = vadd.f32 %v3328_v30, %v2582_v45 }
 0x402   : > { %v2598_v5 = vmax.f32 %v2590_v42, 0.0 }
 0x403   : > { %v2551_v58 = vpop.f32.mrf.mxu2 }
 0x404   : > { %2606 = vst [vmem:[%s5055_s26 + $0x10] sm:$0xff] %v2598_v5  ;;  %v2571_v39 = vmul.f32 %v3320_v31, %v2551_v58 }
 0x406   : > { %v2583_v6 = vadd.f32 %v3321_v1, %v2571_v39 }
 0x408   : > { %v2591_v15 = vadd.f32 %v3329_v33, %v2583_v6 }
 0x40a   : > { %v2599_v13 = vmax.f32 %v2591_v15, 0.0 }
 0x40b   : > { %v2554_v18 = vpop.f32.mrf.mxu2 }
 0x40c   : > { %2607 = vst [vmem:[%s5055_s26 + $0x18] sm:$0xff] %v2599_v13  ;;  %v2572_v8 = vmul.f32 %v3320_v31, %v2554_v18 }
 0x40e   : > { %v2584_v50 = vadd.f32 %v3321_v1, %v2572_v8 }
 0x410   : > { %v2592_v10 = vadd.f32 %v3330_v54, %v2584_v50 }
 0x412   : > { %v2600_v40 = vmax.f32 %v2592_v10, 0.0 }
 0x413   : > { %v2556_v51 = vpop.f32.mrf.mxu2 }
 0x414   : > { %2608 = vst [vmem:[%s5055_s26 + $0x20] sm:$0xff] %v2600_v40  ;;  %v2573_v36 = vmul.f32 %v3320_v31, %v2556_v51 }
 0x416   : > { %v2585_v44 = vadd.f32 %v3321_v1, %v2573_v36 }
 0x418   : > { %v2593_v26 = vadd.f32 %v3331_v21, %v2585_v44 }
 0x41a   : > { %v2601_v4 = vmax.f32 %v2593_v26, 0.0 }
 0x41b   : > { %v2559_v9 = vpop.f32.mrf.mxu2 }
 0x41c   : > { %2609 = vst [vmem:[%s5055_s26 + $0x28] sm:$0xff] %v2601_v4  ;;  %v2574_v0 = vmul.f32 %v3320_v31, %v2559_v9 }
 0x41e   : > { %v2586_v25 = vadd.f32 %v3321_v1, %v2574_v0 }
 0x420   : > { %v2594_v61 = vadd.f32 %v3332_v20, %v2586_v25 }
 0x422   : > { %v2602_v28 = vmax.f32 %v2594_v61, 0.0 }
 0x423   : > { %v2561_v53 = vpop.f32.mrf.mxu2 }
 0x424   : > { %2610 = vst [vmem:[%s5055_s26 + $0x30] sm:$0xff] %v2602_v28  ;;  %v2575_v14 = vmul.f32 %v3320_v31, %v2561_v53 }
 0x426   : > { %v2587_v29 = vadd.f32 %v3321_v1, %v2575_v14 }
 0x428   : > { %v2595_v62 = vadd.f32 %v3333_v24, %v2587_v29 }
 0x42a   : > { %v2603_v56 = vmax.f32 %v2595_v62, 0.0 }
 0x42c   : > { %2611 = vst [vmem:[%s5055_s26 + $0x38] sm:$0xff] %v2603_v56 }
 0x42d PF: > { %s26_s21 = sadd.s32 1, %s3340_s21  }
 0x42e   : > { %p23_p4 = scmp.ge.s32.totalorder %s26_s21, 4  }
 0x430   :  { %25 = sbr.rel (!%p23_p4) target bundleno = 2 (0x2), region = 114 }

</bundles_post_ra>
